<compile_context>
chip_gen: v7x
topology: tpu7x:2x2x1
jax: 0.10.0
libtpu: 0.0.40
codegen_flags: <defaults>
</compile_context>

<pallas_src>
import functools

import jax
import jax.numpy as jnp
from jax import lax
from jax.experimental import pallas as pl
from jax.experimental.pallas import tpu as pltpu


def _round_up(x, m):
    return (x + m - 1) // m * m


# -----------------------------------------------------------------------------
# One-time probe: direction of pltpu.roll's *dynamic* lane rotation.
# Returns +1 if it matches jnp.roll (result[i] = x[i - shift]), -1 for the
# opposite convention, None if dynamic roll does not lower on this backend.
# -----------------------------------------------------------------------------
@functools.lru_cache(maxsize=None)
def _dynamic_roll_direction():
    def probe_kernel(s_ref, x_ref, o_ref):
        o_ref[...] = pltpu.roll(x_ref[...], s_ref[0], axis=1)

    try:
        x = lax.broadcasted_iota(jnp.int32, (8, 128), 1)
        out = pl.pallas_call(
            probe_kernel,
            out_shape=jax.ShapeDtypeStruct((8, 128), jnp.int32),
            grid_spec=pltpu.PrefetchScalarGridSpec(
                num_scalar_prefetch=1,
                grid=(1,),
                in_specs=[pl.BlockSpec((8, 128), lambda i, s: (0, 0))],
                out_specs=pl.BlockSpec((8, 128), lambda i, s: (0, 0)),
            ),
        )(jnp.array([1], jnp.int32), x)
        v = int(out[0, 0])
        if v == 127:
            return 1
        if v == 1:
            return -1
        return None
    except Exception:
        return None


def _vmem_limit_bytes():
    """Generation-aware scoped-VMEM request (v5e/v6e: 128 MiB phys, v7x: 64 MiB)."""
    try:
        cap = int(pltpu.get_tpu_info().vmem_capacity_bytes)
    except Exception:
        cap = 64 * 1024 * 1024  # conservative: v7x per-TensorCore VMEM
    return max(24 * 1024 * 1024, min(cap * 3 // 4, cap - (8 << 20)))


def _pick_block_n(n, per_sample_bytes, fixed_bytes, vmem_limit):
    budget = int(vmem_limit * 0.8) - fixed_bytes
    bn = max(1, min(n, budget // per_sample_bytes))
    if n >= 2:
        bn = min(bn, pl.cdiv(n, 2))  # keep >= 2 grid steps (v7x has 2 TensorCores)
    for b in range(bn, max(bn // 2, 1) - 1, -1):  # prefer an exact divisor of n
        if n % b == 0:
            return b
    return bn  # ragged tail handled in-kernel via index clamp


# -----------------------------------------------------------------------------
# Fast path: in-kernel replicate pad + dynamic-slice / dynamic-roll crop.
# -----------------------------------------------------------------------------
def _random_shift_crop_fast(x, shift_flat, pad, roll_dir):
    n, c, h, w = x.shape
    hp = h + 2 * pad                    # row-padded height in the VMEM scratch
    lw = _round_up(max(w, 128), 128)    # 128-aligned lane width for the roll
    itemsize = jnp.dtype(x.dtype).itemsize

    vmem_limit = _vmem_limit_bytes()
    per_sample = 4 * c * h * w * itemsize                       # in+out, double-buffered
    fixed = c * hp * lw * itemsize + 8 * c * h * lw * 4 + (2 << 20)  # scratch + temps
    block_n = _pick_block_n(n, per_sample, fixed, vmem_limit)
    num_blocks = pl.cdiv(n, block_n)

    def kernel(shift_ref, x_ref, o_ref, buf_ref):
        base = pl.program_id(0) * block_n
        # Hoisted once per grid step (JAX does not CSE broadcast_in_dim).
        lane = lax.broadcasted_iota(jnp.int32, (c, h, w), 2)

        def body(j, carry):
            # Tail clamp: for a ragged last block, recompute a valid sample;
            # Pallas drops the out-of-range part of the output block write.
            i = jnp.minimum(base + j, n - 1)
            sx = shift_ref[2 * i]          # column shift, 0..2*pad
            sy = shift_ref[2 * i + 1]      # row shift,    0..2*pad
            xv = x_ref[j]                  # (c, h, w)

            # Replicate *row* padding into scratch: image rows at [pad, pad+h),
            # edge rows above/below, lanes [0, w).  Lanes [w, lw) stay unwritten
            # -- they are never selected into the output (see clamp below).
            buf_ref[:, pad:pad + h, 0:w] = xv
            buf_ref[:, 0:pad, 0:w] = jnp.broadcast_to(xv[:, 0:1, :], (c, pad, w))
            buf_ref[:, pad + h:hp, 0:w] = jnp.broadcast_to(
                xv[:, h - 1:h, :], (c, pad, w))

            # Row crop: one dynamic sublane slice.
            rows = buf_ref[:, pl.ds(sy, h), :]        # (c, h, lw)

            # Column crop: one dynamic lane roll over the 128-aligned width, then
            # replicate-clamp the (at most `pad`) wrapped edge columns.
            sxc = sx - pad                            # in [-pad, pad]
            if roll_dir > 0:   # pltpu.roll == jnp.roll: out[i] = in[i - shift]
                shift_amt = lax.rem(jnp.int32(lw + pad) - sx, jnp.int32(lw))
            else:              # opposite convention:   out[i] = in[i + shift]
                shift_amt = lax.rem(jnp.int32(lw - pad) + sx, jnp.int32(lw))
            rolled = pltpu.roll(rows, shift_amt, axis=2)[:, :, 0:w]
            left = jnp.broadcast_to(rows[:, :, 0:1], (c, h, w))
            right = jnp.broadcast_to(rows[:, :, w - 1:w], (c, h, w))
            out = jnp.where(lane + sxc >= w, right, rolled)
            out = jnp.where(lane + sxc < 0, left, out)

            # TODO(synk): if profiling shows vst binding on v5e (W < 128 masked
            # stores), expose the output as a lane-dense (N, C, H*W) view.
            o_ref[j] = out
            return carry

        lax.fori_loop(0, block_n, body, 0)

    return pl.pallas_call(
        kernel,
        out_shape=jax.ShapeDtypeStruct((n, c, h, w), x.dtype),
        grid_spec=pltpu.PrefetchScalarGridSpec(
            num_scalar_prefetch=1,          # flat shift array -> SMEM
            grid=(num_blocks,),
            in_specs=[pl.BlockSpec((block_n, c, h, w), lambda i, s: (i, 0, 0, 0))],
            out_specs=pl.BlockSpec((block_n, c, h, w), lambda i, s: (i, 0, 0, 0)),
            scratch_shapes=[pltpu.VMEM((c, hp, lw), x.dtype)],
        ),
        compiler_params=pltpu.CompilerParams(
            dimension_semantics=("parallel",),
            vmem_limit_bytes=vmem_limit,
        ),
    )(shift_flat, x)


# -----------------------------------------------------------------------------
# Fallback path (static ops only, previously validated structure): wrapper-side
# replicate pad + masked select-accumulate crop.  Used only if the dynamic-roll
# probe / fast-path lowering fails on a given backend.
# -----------------------------------------------------------------------------
def _random_shift_crop_fallback(x, shift_flat, pad):
    n, c, h, w = x.shape
    hp, wp = h + 2 * pad, w + 2 * pad
    xp = jnp.pad(x, ((0, 0), (0, 0), (pad, pad), (pad, pad)), mode="edge")
    itemsize = jnp.dtype(x.dtype).itemsize

    vmem_limit = _vmem_limit_bytes()
    per_sample = 2 * c * (hp * wp + h * w) * itemsize
    block_n = 1
    for b in (8, 4, 2, 1):  # small static unroll keeps compile time sane
        if b <= n and b * per_sample <= int(vmem_limit * 0.5):
            block_n = b
            break
    num_blocks = pl.cdiv(n, block_n)
    n_shift = 2 * pad + 1

    def kernel(shift_ref, xp_ref, o_ref):
        base = pl.program_id(0) * block_n
        for j in range(block_n):
            i = jnp.minimum(base + j, n - 1)
            sx = shift_ref[2 * i]
            sy = shift_ref[2 * i + 1]
            xv = xp_ref[j]                          # (c, hp, wp)
            rows = xv[:, 0:h, :]
            for s in range(1, n_shift):             # exactly one candidate matches
                rows = jnp.where(sy == s, xv[:, s:s + h, :], rows)
            out = rows[:, :, 0:w]
            for s in range(1, n_shift):
                out = jnp.where(sx == s, rows[:, :, s:s + w], out)
            o_ref[j] = out

    return pl.pallas_call(
        kernel,
        out_shape=jax.ShapeDtypeStruct((n, c, h, w), x.dtype),
        grid_spec=pltpu.PrefetchScalarGridSpec(
            num_scalar_prefetch=1,
            grid=(num_blocks,),
            in_specs=[pl.BlockSpec((block_n, c, hp, wp), lambda i, s: (i, 0, 0, 0))],
            out_specs=pl.BlockSpec((block_n, c, h, w), lambda i, s: (i, 0, 0, 0)),
        ),
        compiler_params=pltpu.CompilerParams(
            dimension_semantics=("parallel",),
            vmem_limit_bytes=vmem_limit,
        ),
    )(shift_flat, xp)


def random_shifts_aug(x, pad, key):
    """JAX/Pallas equivalent of RandomShiftsAug(pad).forward(x).  x: (N, C, H, W)."""
    n, c, h, w = x.shape
    assert h == w
    if pad == 0:
        return x

    # Per-sample integer pixel shifts, same distribution as torch.randint.
    # Flat int32 SMEM layout: [2i] = x/column shift, [2i+1] = y/row shift
    # (torch grid channel order).
    shift = jax.random.randint(key, (n, 2), 0, 2 * pad + 1, dtype=jnp.int32)
    shift_flat = shift.reshape(-1)

    roll_dir = _dynamic_roll_direction()
    if roll_dir is not None:
        try:
            # Lowering/compilation of the eager pallas_call is synchronous, so an
            # unsupported dynamic slice/roll on this backend surfaces here.
            # (Note: when called under jit, the fallback cannot be selected at
            # trace time; call once eagerly to pick the path.)
            return _random_shift_crop_fast(x, shift_flat, pad, roll_dir)
        except Exception:
            pass
    return _random_shift_crop_fallback(x, shift_flat, pad)


if __name__ == "__main__":
    pad = 4
    n, c, h, w = 2, 4, 16, 16

    root = jax.random.PRNGKey(0)
    k_x, k_shift = jax.random.split(root)
    x = jax.random.normal(k_x, (n, c, h, w), dtype=jnp.float32)

    out = jax.block_until_ready(random_shifts_aug(x, pad, k_shift))

    # Reference: the op is exactly an integer-shifted crop of the replicate-
    # padded image (identical to F.grid_sample up to its own ~1e-6 bilinear
    # rounding residue, which the exact selection kernel does not introduce).
    shift = jax.random.randint(k_shift, (n, 2), 0, 2 * pad + 1, dtype=jnp.int32)
    x_pad = jnp.pad(x, ((0, 0), (0, 0), (pad, pad), (pad, pad)), mode="edge")
    ref = jnp.stack([
        lax.dynamic_slice(x_pad[i], (0, int(shift[i, 1]), int(shift[i, 0])), (c, h, w))
        for i in range(n)
    ])

    assert out.shape == (n, c, h, w) and out.dtype == x.dtype
    max_err = float(jnp.max(jnp.abs(out - ref)))
    assert bool(jnp.array_equal(out, ref)), f"max_err={max_err}"
    print("KERNEL_OK")
</pallas_src>

<mosaic_0001>
module attributes {stable_mosaic.version = 11 : i64} {
  func.func @probe_kernel(%arg0: i32, %arg1: memref<1xi32, #tpu.memory_space<smem>>, %arg2: memref<8x128xi32, #tpu.memory_space<vmem>>, %arg3: memref<8x128xi32, #tpu.memory_space<vmem>>) attributes {dimension_semantics = [#tpu.dimension_semantics<arbitrary>], iteration_bounds = array<i64: 1>, scalar_prefetch = 1 : i64, scratch_operands = 0 : i64, tpu.core_type = #tpu.core_type<tc>, window_params = [{pipeline_mode = #tpu.pipeline_mode<synchronous>, transform_indices = @transform_0, window_bounds = array<i64: 8, 128>}, {pipeline_mode = #tpu.pipeline_mode<synchronous>, transform_indices = @transform_1, window_bounds = array<i64: 8, 128>}]} {
    %c0 = arith.constant 0 : index
    %c0_0 = arith.constant 0 : index
    %0 = vector.load %arg2[%c0, %c0_0] : memref<8x128xi32, #tpu.memory_space<vmem>>, vector<8x128xi32>
    %c0_1 = arith.constant 0 : index
    %1 = memref.load %arg1[%c0_1] : memref<1xi32, #tpu.memory_space<smem>>
    %2 = tpu.dynamic_rotate %0 by %1 dim 1 : vector<8x128xi32>, i32 -> vector<8x128xi32>
    %c0_2 = arith.constant 0 : index
    %c0_3 = arith.constant 0 : index
    %3 = vector.load %arg3[%c0_2, %c0_3] : memref<8x128xi32, #tpu.memory_space<vmem>>, vector<8x128xi32>
    tpu.vector_store %arg3[%c0_2, %c0_3], %2 {strides = array<i32>} : memref<8x128xi32, #tpu.memory_space<vmem>>, vector<8x128xi32>,
    return
  }
  func.func @transform_0(%arg0: i32, %arg1: memref<1xi32, #tpu.memory_space<smem>>) -> (i32, i32) {
    %c0_i32 = arith.constant 0 : i32
    %c0_i32_0 = arith.constant 0 : i32
    %c0_i32_1 = arith.constant 0 : i32
    return %c0_i32, %c0_i32_0 : i32, i32
  }
  func.func @transform_1(%arg0: i32, %arg1: memref<1xi32, #tpu.memory_space<smem>>) -> (i32, i32) {
    %c0_i32 = arith.constant 0 : i32
    %c0_i32_0 = arith.constant 0 : i32
    %c0_i32_1 = arith.constant 0 : i32
    return %c0_i32, %c0_i32_0 : i32, i32
  }
}

module attributes {stable_mosaic.version = 11 : i64} {
  func.func @kernel(%arg0: i32, %arg1: memref<4xi32, #tpu.memory_space<smem>>, %arg2: memref<2x4x24x24xf32, #tpu.memory_space<vmem>>, %arg3: memref<2x4x16x16xf32, #tpu.memory_space<vmem>>) attributes {dimension_semantics = [#tpu.dimension_semantics<parallel>], iteration_bounds = array<i64: 1>, scalar_prefetch = 1 : i64, scratch_operands = 0 : i64, tpu.core_type = #tpu.core_type<tc>, window_params = [{transform_indices = @transform_0, window_bounds = array<i64: 2, 4, 24, 24>}, {transform_indices = @transform_1, window_bounds = array<i64: 2, 4, 16, 16>}]} {
    %c2_i32 = arith.constant 2 : i32
    %0 = arith.muli %arg0, %c2_i32 : i32
    %c0_i32 = arith.constant 0 : i32
    %1 = arith.addi %0, %c0_i32 : i32
    %c1_i32 = arith.constant 1 : i32
    %2 = arith.minsi %1, %c1_i32 : i32
    %c2_i32_0 = arith.constant 2 : i32
    %3 = arith.muli %c2_i32_0, %2 : i32
    %4 = arith.index_cast %3 : i32 to index
    %5 = memref.load %arg1[%4] : memref<4xi32, #tpu.memory_space<smem>>
    %c2_i32_1 = arith.constant 2 : i32
    %6 = arith.muli %c2_i32_1, %2 : i32
    %c1_i32_2 = arith.constant 1 : i32
    %7 = arith.addi %6, %c1_i32_2 : i32
    %8 = arith.index_cast %7 : i32 to index
    %9 = memref.load %arg1[%8] : memref<4xi32, #tpu.memory_space<smem>>
    %c0 = arith.constant 0 : index
    %c0_3 = arith.constant 0 : index
    %c0_4 = arith.constant 0 : index
    %c0_5 = arith.constant 0 : index
    %10 = vector.load %arg2[%c0, %c0_3, %c0_4, %c0_5] : memref<2x4x24x24xf32, #tpu.memory_space<vmem>>, vector<1x4x24x24xf32>
    %11 = vector.shape_cast %10 : vector<1x4x24x24xf32> to vector<4x24x24xf32>
    %12 = vector.extract_strided_slice %11 {offsets = [0, 0, 0], sizes = [4, 16, 24], strides = [1, 1, 1]} : vector<4x24x24xf32> to vector<4x16x24xf32>
    %c1_i32_6 = arith.constant 1 : i32
    %13 = arith.cmpi eq, %9, %c1_i32_6 : i32
    %14 = vector.extract_strided_slice %11 {offsets = [0, 1, 0], sizes = [4, 16, 24], strides = [1, 1, 1]} : vector<4x24x24xf32> to vector<4x16x24xf32>
    %15 = arith.select %13, %14, %12 : vector<4x16x24xf32>
    %c2_i32_7 = arith.constant 2 : i32
    %16 = arith.cmpi eq, %9, %c2_i32_7 : i32
    %17 = vector.extract_strided_slice %11 {offsets = [0, 2, 0], sizes = [4, 16, 24], strides = [1, 1, 1]} : vector<4x24x24xf32> to vector<4x16x24xf32>
    %18 = arith.select %16, %17, %15 : vector<4x16x24xf32>
    %c3_i32 = arith.constant 3 : i32
    %19 = arith.cmpi eq, %9, %c3_i32 : i32
    %20 = vector.extract_strided_slice %11 {offsets = [0, 3, 0], sizes = [4, 16, 24], strides = [1, 1, 1]} : vector<4x24x24xf32> to vector<4x16x24xf32>
    %21 = arith.select %19, %20, %18 : vector<4x16x24xf32>
    %c4_i32 = arith.constant 4 : i32
    %22 = arith.cmpi eq, %9, %c4_i32 : i32
    %23 = vector.extract_strided_slice %11 {offsets = [0, 4, 0], sizes = [4, 16, 24], strides = [1, 1, 1]} : vector<4x24x24xf32> to vector<4x16x24xf32>
    %24 = arith.select %22, %23, %21 : vector<4x16x24xf32>
    %c5_i32 = arith.constant 5 : i32
    %25 = arith.cmpi eq, %9, %c5_i32 : i32
    %26 = vector.extract_strided_slice %11 {offsets = [0, 5, 0], sizes = [4, 16, 24], strides = [1, 1, 1]} : vector<4x24x24xf32> to vector<4x16x24xf32>
    %27 = arith.select %25, %26, %24 : vector<4x16x24xf32>
    %c6_i32 = arith.constant 6 : i32
    %28 = arith.cmpi eq, %9, %c6_i32 : i32
    %29 = vector.extract_strided_slice %11 {offsets = [0, 6, 0], sizes = [4, 16, 24], strides = [1, 1, 1]} : vector<4x24x24xf32> to vector<4x16x24xf32>
    %30 = arith.select %28, %29, %27 : vector<4x16x24xf32>
    %c7_i32 = arith.constant 7 : i32
    %31 = arith.cmpi eq, %9, %c7_i32 : i32
    %32 = vector.extract_strided_slice %11 {offsets = [0, 7, 0], sizes = [4, 16, 24], strides = [1, 1, 1]} : vector<4x24x24xf32> to vector<4x16x24xf32>
    %33 = arith.select %31, %32, %30 : vector<4x16x24xf32>
    %c8_i32 = arith.constant 8 : i32
    %34 = arith.cmpi eq, %9, %c8_i32 : i32
    %35 = vector.extract_strided_slice %11 {offsets = [0, 8, 0], sizes = [4, 16, 24], strides = [1, 1, 1]} : vector<4x24x24xf32> to vector<4x16x24xf32>
    %36 = arith.select %34, %35, %33 : vector<4x16x24xf32>
    %37 = vector.extract_strided_slice %36 {offsets = [0, 0, 0], sizes = [4, 16, 16], strides = [1, 1, 1]} : vector<4x16x24xf32> to vector<4x16x16xf32>
    %c1_i32_8 = arith.constant 1 : i32
    %38 = arith.cmpi eq, %5, %c1_i32_8 : i32
    %39 = vector.extract_strided_slice %36 {offsets = [0, 0, 1], sizes = [4, 16, 16], strides = [1, 1, 1]} : vector<4x16x24xf32> to vector<4x16x16xf32>
    %40 = arith.select %38, %39, %37 : vector<4x16x16xf32>
    %c2_i32_9 = arith.constant 2 : i32
    %41 = arith.cmpi eq, %5, %c2_i32_9 : i32
    %42 = vector.extract_strided_slice %36 {offsets = [0, 0, 2], sizes = [4, 16, 16], strides = [1, 1, 1]} : vector<4x16x24xf32> to vector<4x16x16xf32>
    %43 = arith.select %41, %42, %40 : vector<4x16x16xf32>
    %c3_i32_10 = arith.constant 3 : i32
    %44 = arith.cmpi eq, %5, %c3_i32_10 : i32
    %45 = vector.extract_strided_slice %36 {offsets = [0, 0, 3], sizes = [4, 16, 16], strides = [1, 1, 1]} : vector<4x16x24xf32> to vector<4x16x16xf32>
    %46 = arith.select %44, %45, %43 : vector<4x16x16xf32>
    %c4_i32_11 = arith.constant 4 : i32
    %47 = arith.cmpi eq, %5, %c4_i32_11 : i32
    %48 = vector.extract_strided_slice %36 {offsets = [0, 0, 4], sizes = [4, 16, 16], strides = [1, 1, 1]} : vector<4x16x24xf32> to vector<4x16x16xf32>
    %49 = arith.select %47, %48, %46 : vector<4x16x16xf32>
    %c5_i32_12 = arith.constant 5 : i32
    %50 = arith.cmpi eq, %5, %c5_i32_12 : i32
    %51 = vector.extract_strided_slice %36 {offsets = [0, 0, 5], sizes = [4, 16, 16], strides = [1, 1, 1]} : vector<4x16x24xf32> to vector<4x16x16xf32>
    %52 = arith.select %50, %51, %49 : vector<4x16x16xf32>
    %c6_i32_13 = arith.constant 6 : i32
    %53 = arith.cmpi eq, %5, %c6_i32_13 : i32
    %54 = vector.extract_strided_slice %36 {offsets = [0, 0, 6], sizes = [4, 16, 16], strides = [1, 1, 1]} : vector<4x16x24xf32> to vector<4x16x16xf32>
    %55 = arith.select %53, %54, %52 : vector<4x16x16xf32>
    %c7_i32_14 = arith.constant 7 : i32
    %56 = arith.cmpi eq, %5, %c7_i32_14 : i32
    %57 = vector.extract_strided_slice %36 {offsets = [0, 0, 7], sizes = [4, 16, 16], strides = [1, 1, 1]} : vector<4x16x24xf32> to vector<4x16x16xf32>
    %58 = arith.select %56, %57, %55 : vector<4x16x16xf32>
    %c8_i32_15 = arith.constant 8 : i32
    %59 = arith.cmpi eq, %5, %c8_i32_15 : i32
    %60 = vector.extract_strided_slice %36 {offsets = [0, 0, 8], sizes = [4, 16, 16], strides = [1, 1, 1]} : vector<4x16x24xf32> to vector<4x16x16xf32>
    %61 = arith.select %59, %60, %58 : vector<4x16x16xf32>
    %c0_16 = arith.constant 0 : index
    %c0_17 = arith.constant 0 : index
    %c0_18 = arith.constant 0 : index
    %c0_19 = arith.constant 0 : index
    %62 = vector.load %arg3[%c0_16, %c0_17, %c0_18, %c0_19] : memref<2x4x16x16xf32, #tpu.memory_space<vmem>>, vector<1x4x16x16xf32>
    %63 = vector.shape_cast %62 : vector<1x4x16x16xf32> to vector<4x16x16xf32>
    %64 = vector.shape_cast %61 : vector<4x16x16xf32> to vector<1x4x16x16xf32>
    tpu.vector_store %arg3[%c0_16, %c0_17, %c0_18, %c0_19], %64 {strides = array<i32>} : memref<2x4x16x16xf32, #tpu.memory_space<vmem>>, vector<1x4x16x16xf32>,
    %c1_i32_20 = arith.constant 1 : i32
    %65 = arith.addi %0, %c1_i32_20 : i32
    %c1_i32_21 = arith.constant 1 : i32
    %66 = arith.minsi %65, %c1_i32_21 : i32
    %c2_i32_22 = arith.constant 2 : i32
    %67 = arith.muli %c2_i32_22, %66 : i32
    %68 = arith.index_cast %67 : i32 to index
    %69 = memref.load %arg1[%68] : memref<4xi32, #tpu.memory_space<smem>>
    %c2_i32_23 = arith.constant 2 : i32
    %70 = arith.muli %c2_i32_23, %66 : i32
    %c1_i32_24 = arith.constant 1 : i32
    %71 = arith.addi %70, %c1_i32_24 : i32
    %72 = arith.index_cast %71 : i32 to index
    %73 = memref.load %arg1[%72] : memref<4xi32, #tpu.memory_space<smem>>
    %c1 = arith.constant 1 : index
    %c0_25 = arith.constant 0 : index
    %c0_26 = arith.constant 0 : index
    %c0_27 = arith.constant 0 : index
    %74 = vector.load %arg2[%c1, %c0_25, %c0_26, %c0_27] : memref<2x4x24x24xf32, #tpu.memory_space<vmem>>, vector<1x4x24x24xf32>
    %75 = vector.shape_cast %74 : vector<1x4x24x24xf32> to vector<4x24x24xf32>
    %76 = vector.extract_strided_slice %75 {offsets = [0, 0, 0], sizes = [4, 16, 24], strides = [1, 1, 1]} : vector<4x24x24xf32> to vector<4x16x24xf32>
    %c1_i32_28 = arith.constant 1 : i32
    %77 = arith.cmpi eq, %73, %c1_i32_28 : i32
    %78 = vector.extract_strided_slice %75 {offsets = [0, 1, 0], sizes = [4, 16, 24], strides = [1, 1, 1]} : vector<4x24x24xf32> to vector<4x16x24xf32>
    %79 = arith.select %77, %78, %76 : vector<4x16x24xf32>
    %c2_i32_29 = arith.constant 2 : i32
    %80 = arith.cmpi eq, %73, %c2_i32_29 : i32
    %81 = vector.extract_strided_slice %75 {offsets = [0, 2, 0], sizes = [4, 16, 24], strides = [1, 1, 1]} : vector<4x24x24xf32> to vector<4x16x24xf32>
    %82 = arith.select %80, %81, %79 : vector<4x16x24xf32>
    %c3_i32_30 = arith.constant 3 : i32
    %83 = arith.cmpi eq, %73, %c3_i32_30 : i32
    %84 = vector.extract_strided_slice %75 {offsets = [0, 3, 0], sizes = [4, 16, 24], strides = [1, 1, 1]} : vector<4x24x24xf32> to vector<4x16x24xf32>
    %85 = arith.select %83, %84, %82 : vector<4x16x24xf32>
    %c4_i32_31 = arith.constant 4 : i32
    %86 = arith.cmpi eq, %73, %c4_i32_31 : i32
    %87 = vector.extract_strided_slice %75 {offsets = [0, 4, 0], sizes = [4, 16, 24], strides = [1, 1, 1]} : vector<4x24x24xf32> to vector<4x16x24xf32>
    %88 = arith.select %86, %87, %85 : vector<4x16x24xf32>
    %c5_i32_32 = arith.constant 5 : i32
    %89 = arith.cmpi eq, %73, %c5_i32_32 : i32
    %90 = vector.extract_strided_slice %75 {offsets = [0, 5, 0], sizes = [4, 16, 24], strides = [1, 1, 1]} : vector<4x24x24xf32> to vector<4x16x24xf32>
    %91 = arith.select %89, %90, %88 : vector<4x16x24xf32>
    %c6_i32_33 = arith.constant 6 : i32
    %92 = arith.cmpi eq, %73, %c6_i32_33 : i32
    %93 = vector.extract_strided_slice %75 {offsets = [0, 6, 0], sizes = [4, 16, 24], strides = [1, 1, 1]} : vector<4x24x24xf32> to vector<4x16x24xf32>
    %94 = arith.select %92, %93, %91 : vector<4x16x24xf32>
    %c7_i32_34 = arith.constant 7 : i32
    %95 = arith.cmpi eq, %73, %c7_i32_34 : i32
    %96 = vector.extract_strided_slice %75 {offsets = [0, 7, 0], sizes = [4, 16, 24], strides = [1, 1, 1]} : vector<4x24x24xf32> to vector<4x16x24xf32>
    %97 = arith.select %95, %96, %94 : vector<4x16x24xf32>
    %c8_i32_35 = arith.constant 8 : i32
    %98 = arith.cmpi eq, %73, %c8_i32_35 : i32
    %99 = vector.extract_strided_slice %75 {offsets = [0, 8, 0], sizes = [4, 16, 24], strides = [1, 1, 1]} : vector<4x24x24xf32> to vector<4x16x24xf32>
    %100 = arith.select %98, %99, %97 : vector<4x16x24xf32>
    %101 = vector.extract_strided_slice %100 {offsets = [0, 0, 0], sizes = [4, 16, 16], strides = [1, 1, 1]} : vector<4x16x24xf32> to vector<4x16x16xf32>
    %c1_i32_36 = arith.constant 1 : i32
    %102 = arith.cmpi eq, %69, %c1_i32_36 : i32
    %103 = vector.extract_strided_slice %100 {offsets = [0, 0, 1], sizes = [4, 16, 16], strides = [1, 1, 1]} : vector<4x16x24xf32> to vector<4x16x16xf32>
    %104 = arith.select %102, %103, %101 : vector<4x16x16xf32>
    %c2_i32_37 = arith.constant 2 : i32
    %105 = arith.cmpi eq, %69, %c2_i32_37 : i32
    %106 = vector.extract_strided_slice %100 {offsets = [0, 0, 2], sizes = [4, 16, 16], strides = [1, 1, 1]} : vector<4x16x24xf32> to vector<4x16x16xf32>
    %107 = arith.select %105, %106, %104 : vector<4x16x16xf32>
    %c3_i32_38 = arith.constant 3 : i32
    %108 = arith.cmpi eq, %69, %c3_i32_38 : i32
    %109 = vector.extract_strided_slice %100 {offsets = [0, 0, 3], sizes = [4, 16, 16], strides = [1, 1, 1]} : vector<4x16x24xf32> to vector<4x16x16xf32>
    %110 = arith.select %108, %109, %107 : vector<4x16x16xf32>
    %c4_i32_39 = arith.constant 4 : i32
    %111 = arith.cmpi eq, %69, %c4_i32_39 : i32
    %112 = vector.extract_strided_slice %100 {offsets = [0, 0, 4], sizes = [4, 16, 16], strides = [1, 1, 1]} : vector<4x16x24xf32> to vector<4x16x16xf32>
    %113 = arith.select %111, %112, %110 : vector<4x16x16xf32>
    %c5_i32_40 = arith.constant 5 : i32
    %114 = arith.cmpi eq, %69, %c5_i32_40 : i32
    %115 = vector.extract_strided_slice %100 {offsets = [0, 0, 5], sizes = [4, 16, 16], strides = [1, 1, 1]} : vector<4x16x24xf32> to vector<4x16x16xf32>
    %116 = arith.select %114, %115, %113 : vector<4x16x16xf32>
    %c6_i32_41 = arith.constant 6 : i32
    %117 = arith.cmpi eq, %69, %c6_i32_41 : i32
    %118 = vector.extract_strided_slice %100 {offsets = [0, 0, 6], sizes = [4, 16, 16], strides = [1, 1, 1]} : vector<4x16x24xf32> to vector<4x16x16xf32>
    %119 = arith.select %117, %118, %116 : vector<4x16x16xf32>
    %c7_i32_42 = arith.constant 7 : i32
    %120 = arith.cmpi eq, %69, %c7_i32_42 : i32
    %121 = vector.extract_strided_slice %100 {offsets = [0, 0, 7], sizes = [4, 16, 16], strides = [1, 1, 1]} : vector<4x16x24xf32> to vector<4x16x16xf32>
    %122 = arith.select %120, %121, %119 : vector<4x16x16xf32>
    %c8_i32_43 = arith.constant 8 : i32
    %123 = arith.cmpi eq, %69, %c8_i32_43 : i32
    %124 = vector.extract_strided_slice %100 {offsets = [0, 0, 8], sizes = [4, 16, 16], strides = [1, 1, 1]} : vector<4x16x24xf32> to vector<4x16x16xf32>
    %125 = arith.select %123, %124, %122 : vector<4x16x16xf32>
    %c1_44 = arith.constant 1 : index
    %c0_45 = arith.constant 0 : index
    %c0_46 = arith.constant 0 : index
    %c0_47 = arith.constant 0 : index
    %126 = vector.load %arg3[%c1_44, %c0_45, %c0_46, %c0_47] : memref<2x4x16x16xf32, #tpu.memory_space<vmem>>, vector<1x4x16x16xf32>
    %127 = vector.shape_cast %126 : vector<1x4x16x16xf32> to vector<4x16x16xf32>
    %128 = vector.shape_cast %125 : vector<4x16x16xf32> to vector<1x4x16x16xf32>
    tpu.vector_store %arg3[%c1_44, %c0_45, %c0_46, %c0_47], %128 {strides = array<i32>} : memref<2x4x16x16xf32, #tpu.memory_space<vmem>>, vector<1x4x16x16xf32>,
    return
  }
  func.func @transform_0(%arg0: i32, %arg1: memref<4xi32, #tpu.memory_space<smem>>) -> (i32, i32, i32, i32) {
    %c0_i32 = arith.constant 0 : i32
    %c0_i32_0 = arith.constant 0 : i32
    %c0_i32_1 = arith.constant 0 : i32
    %c0_i32_2 = arith.constant 0 : i32
    return %arg0, %c0_i32, %c0_i32_0, %c0_i32_1 : i32, i32, i32, i32
  }
  func.func @transform_1(%arg0: i32, %arg1: memref<4xi32, #tpu.memory_space<smem>>) -> (i32, i32, i32, i32) {
    %c0_i32 = arith.constant 0 : i32
    %c0_i32_0 = arith.constant 0 : i32
    %c0_i32_1 = arith.constant 0 : i32
    %c0_i32_2 = arith.constant 0 : i32
    return %arg0, %c0_i32, %c0_i32_0, %c0_i32_1 : i32, i32, i32, i32
  }
}

</mosaic_0001>

<bundles_post_ra>
// kernel: tpu_custom_call.1
= control target key start
LH: loop header
LB: loop body
LE: loop exit
PB: predicated region body
PF: predicated region fallthrough
CT: control target
= control target key end

     0   :  { %8 = vsyncpa [#allocation5], 0  ;;  %s139_s0 = inlined_call_operand.<no memory space> [shape: s32[1], index: 0, kind: input, shape index: {}]   ;;  %s140_s1 = inlined_call_operand.hbm [shape: s32[8,128], index: 1, kind: input, shape index: {}]   ;;  %s141_s2 = inlined_call_operand.hbm [shape: s32[8,128], index: 2, kind: output, shape index: {}]  }
   0x1   :  { %9 = vsyncpa [#allocation6], 0  ;;  %s95_s9 = smov [#allocation4]   ;;  %s47_s13 = scalar_lea.hbm %s140_s1, 128 }
   0x2   :  { %s16_s10 = sshll.u32 %s95_s9, 4  ;;  %p48_p0 = scmp.ne.s32.totalorder %s140_s1, %s47_s13  ;;  %s17_s10 = int_to_ptr.vmem [resolvable:$true] %s16_s10 }
   0x3   :  { %p51_p1 = scmp.lt.u32.totalorder %s47_s13, %s140_s1 }
   0x5   :  { %p53_p2 = pnand %p51_p1, %p48_p0 }
   0x7   :  { %56 = shalt.err (!%p53_p2)
}
   0x8   :  { %s57_s18 = scalar_lea.vmem %s17_s10, 128  ;;  %p62_p4 = scmp.lt.s32.totalorder %s17_s10, %s17_s10 }
   0x9   :  { %p58_p3 = scmp.ne.s32.totalorder %s17_s10, %s57_s18  ;;  %p63_p5 = scmp.lt.s32.totalorder %s57_s18, %s57_s18 }
   0xb   :  { %p64_p6 = por %p63_p5, %p62_p4 }
   0xd   :  { %p65_p7 = pnand %p64_p6, %p58_p3 }
   0xf   :  { %68 = shalt.err (!%p65_p7)
}
  0x10   :  { %19 = dma.hbm_to_vmem [thread:$0]  %s140_s1, 128, %s17_s10, [#allocation5]  }
  0x11   :  { %91 = dma.done.wait [#allocation5], 128  }
  0x12   :  { %92 = vsyncadd [#allocation5], 4294967168  ;;  %s25_s23 = sand.u32 127, %s139_s0   ;;  %v23_v0 = vld [vmem:[#allocation4] sm:$0xff]  ;;  %s96_s24 = smov [#allocation7]  }
  0x13   :  { %27 = vrot.lane.b32.xlu0 %v23_v0, %s25_s23  ;;  %s36_s25 = sshll.u32 %s96_s24, 4  ;;  %s37_s25 = int_to_ptr.vmem [resolvable:$true] %s36_s25 }
  0x14   :  { %s69_s26 = scalar_lea.vmem %s37_s25, 128  ;;  %p74_p9 = scmp.lt.s32.totalorder %s37_s25, %s37_s25 }
  0x15   :  { %p70_p8 = scmp.ne.s32.totalorder %s37_s25, %s69_s26  ;;  %p75_p10 = scmp.lt.s32.totalorder %s69_s26, %s69_s26 }
  0x17   :  { %p76_p11 = por %p75_p10, %p74_p9 }
  0x19   :  { %p77_p12 = pnand %p76_p11, %p70_p8 }
  0x85   :  { %v28_v1 = vpop.permute.xlu0 %27 }
  0x86   :  { %29 = vst [vmem:[#allocation7] sm:$0xff] %v28_v1 }
  0x87   :  { %80 = shalt.err (!%p77_p12)
}
  0x88   :  { %s81_s28 = scalar_lea.hbm %s141_s2, 128 }
  0x89   :  { %p82_p13 = scmp.ne.s32.totalorder %s141_s2, %s81_s28  ;;  %p85_p0 = scmp.lt.u32.totalorder %s81_s28, %s141_s2 }
  0x8b   :  { %p87_p1 = pnand %p85_p0, %p82_p13 }
  0x8d   :  { %90 = shalt.err (!%p87_p1)
}
  0x8e   :  { %39 = dma.vmem_to_hbm [thread:$0]  %s37_s25, 128, %s141_s2, [#allocation6]  }
  0x8f   :  { %93 = dma.done.wait [#allocation6], 128  }
  0x90   :  { %94 = vsyncadd [#allocation6], 4294967168 }
  0x91   :  { %43 = vsyncpa [#allocation5], 1 }
  0x92   :  { %44 = vsyncpa [#allocation6], 1 }

// kernel: tpu_custom_call.1
= control target key start
LH: loop header
LB: loop body
LE: loop exit
PB: predicated region body
PF: predicated region fallthrough
CT: control target
= control target key end

     0   :  { %s3480_s0 = inlined_call_operand.hbm [shape: s32[4], index: 0, kind: input, shape index: {}]   ;;  %s3481_s1 = inlined_call_operand.hbm [shape: f32[2,4,24,24], index: 1, kind: input, shape index: {}]   ;;  %s3482_s2 = inlined_call_operand.hbm [shape: f32[2,4,16,16], index: 2, kind: output, shape index: {}]  }
   0x1   :  { %s1801_s11 = scalar_lea.hbm %s3480_s0, 16 }
   0x2   :  { %p1802_p0 = scmp.ne.s32.totalorder %s3480_s0, %s1801_s11  ;;  %p1805_p1 = scmp.lt.u32.totalorder %s1801_s11, %s3480_s0 }
   0x4   :  { %p1807_p2 = pnand %p1805_p1, %p1802_p0 }
   0x6   :  { %1810 = shalt.err (!%p1807_p2)  }
   0x7   :  { %s1861_s16 = smov [#allocation3]  }
   0x8   :  { %8 = dma.hbm_to_smem %s3480_s0, 16, %s1861_s16, [#allocation2] }
   0x9   :  { %1855 = dma.done.wait [#allocation2], 16 }
   0xa   :  { %1856 = vsyncadd [#allocation2], 4294967280 }
   0xb   :  { %10 = sfence }
   0xc   :  { %11 = vsyncpa [#allocation5], 0 }
   0xd   :  { %12 = vsyncpa [#allocation6], 0  ;;  %s1862_s19 = smov [#allocation4]   ;;  %s1811_s23 = scalar_lea.hbm %s3481_s1, 3072 }
   0xe   :  { %s18_s20 = sshll.u32 %s1862_s19, 4  ;;  %p1812_p3 = scmp.ne.s32.totalorder %s3481_s1, %s1811_s23  ;;  %s19_s20 = int_to_ptr.vmem [resolvable:$true] %s18_s20 }
   0xf   :  { %p1815_p4 = scmp.lt.u32.totalorder %s1811_s23, %s3481_s1 }
  0x11   :  { %p1817_p5 = pnand %p1815_p4, %p1812_p3 }
  0x13   :  { %1820 = shalt.err (!%p1817_p5)
}
  0x14   :  { %s1821_s0 = scalar_lea.vmem %s19_s20, 3072  ;;  %p1826_p7 = scmp.lt.s32.totalorder %s19_s20, %s19_s20 }
  0x15   :  { %p1822_p6 = scmp.ne.s32.totalorder %s19_s20, %s1821_s0  ;;  %p1827_p8 = scmp.lt.s32.totalorder %s1821_s0, %s1821_s0 }
  0x17   :  { %p1828_p9 = por %p1827_p8, %p1826_p7 }
  0x19   :  { %p1829_p10 = pnand %p1828_p9, %p1822_p6 }
  0x1b   :  { %1832 = shalt.err (!%p1829_p10)
}
  0x1c   :  { %s1863_s28 = smov 128   ;;  %s1864_s29 = smov 8  }
  0x1d   :  { %24 = dma.hbm_to_vmem [thread:$0]  %s3481_s1, 3072, %s19_s20, [#allocation5], %s1863_s28, %s1863_s28, %s1864_s29  }
  0x1e   :  { %1857 = dma.done.wait [#allocation5], 3072  }
  0x1f   :  { %1858 = vsyncadd [#allocation5], 4294964224  ;;  %s1910_s4 = sld [smem:[#allocation3 + $0x1]]  ;;  %v1912_v0 = vld [vmem:[#allocation4] sm:$0xff]  ;;  %v1914_v1 = vld [vmem:[#allocation4 + $0x8] sm:$0xff]  ;;  %vm59_vm0 = vcmask 1040384  }
  0x20   :  { %v1918_v2 = vld [vmem:[#allocation4 + $0x18] sm:$0xff]  ;;  %v60_v3 = vrot.slane %v1912_v0, 7  ;;  %v61_v4 = vrot.slane %v1914_v1, 7  ;;  %v1924_v5 = vld [vmem:[#allocation4 + $0x20] sm:$0xff]  ;;  %v1928_v8 = vld [vmem:[#allocation4 + $0x30] sm:$0xff]  ;;  %s1865_s12 = smov 1  }
  0x21   :  { %v63_v6 = vrot.slane %v1918_v2, 7  ;;  %v64_v7 = vrot.slane %v1924_v5, 7  ;;  %v1931_v10 = vld [vmem:[#allocation4 + $0x38] sm:$0xff]  ;;  %v1933_v11 = vld [vmem:[#allocation4 + $0x48] sm:$0xff]  ;;  %v66_v14 = vrot.slane %v1928_v8, 7  ;;  %v1939_v15 = vld [vmem:[#allocation4 + $0x50] sm:$0xff] }
  0x22   :  { %v62_v9 = vsel %vm59_vm0, %v60_v3, %v61_v4  ;;  %v1947_v18 = vld [vmem:[#allocation4 + $0x10] sm:$0xff]  ;;  %v67_v19 = vrot.slane %v1931_v10, 7  ;;  %v69_v20 = vrot.slane %v1933_v11, 7  ;;  %v70_v28 = vrot.slane %v1939_v15, 7  ;;  %v2018_v53 = vld [vmem:[#allocation4 + $0x28] sm:$0xff]  ;;  %s2184_s13 = sld [smem:[#allocation3 + $0x3]] }
  0x23   :  { %v65_v13 = vsel %vm59_vm0, %v63_v6, %v64_v7  ;;  %s2807_s22 = sld [smem:[#allocation3]]  ;;  %s2884_s24 = sld [smem:[#allocation3 + $0x2]] }
  0x25   :  { %p47_p11 = scmp.eq.s32.totalorder %s1910_s4, 1  ;;  %p96_p12 = scmp.eq.s32.totalorder %s1910_s4, 2 }
  0x26   :  { %p156_p13 = scmp.eq.s32.totalorder %s1910_s4, 3  ;;  %p216_p0 = scmp.eq.s32.totalorder %s1910_s4, 4 }
  0x27   :  { %s48_s1 = scalar_select %p47_p11, 1, 0 }
  0x28   :  { %s97_s5 = scalar_select %p96_p12, 1, 0 }
  0x29   :  { %v49_v12 = vstv %s48_s1  ;;  %s157_s6 = scalar_select %p156_p13, 1, 0 }
  0x2a   :  { %vm1941_vm1 = vcmp.eq.s32.totalorder %v49_v12, 1  ;;  %v98_v17 = vstv %s97_s5  ;;  %s217_s7 = scalar_select %p216_p0, 1, 0 }
  0x2b   :  { %v84_v21 = vsel %vm1941_vm1, %v1912_v0, %v60_v3  ;;  %v85_v22 = vsel %vm1941_vm1, %v1914_v1, %v62_v9  ;;  %vm1957_vm2 = vcmp.eq.s32.totalorder %v98_v17, 1  ;;  %v158_v24 = vstv %s157_s6  ;;  %p276_p1 = scmp.eq.s32.totalorder %s1910_s4, 5  ;;  %p336_p2 = scmp.eq.s32.totalorder %s1910_s4, 6 }
  0x2c   :  { %v112_v25 = vrot.slane %v84_v21, 7  ;;  %v113_v26 = vrot.slane %v85_v22, 7  ;;  %v218_v27 = vstv %s217_s7  ;;  %p396_p3 = scmp.eq.s32.totalorder %s1910_s4, 7  ;;  %p456_p4 = scmp.eq.s32.totalorder %s1910_s4, 8  ;;  %vm1966_vm3 = vcmp.eq.s32.totalorder %v158_v24, 1 }
  0x2d   :  { %s277_s8 = scalar_select %p276_p1, 1, 0  ;;  %v87_v30 = vsel %vm1941_vm1, %v1918_v2, %v63_v6  ;;  %v88_v31 = vsel %vm1941_vm1, %v1924_v5, %v65_v13  ;;  %v86_v32 = vsel %vm1941_vm1, %v1947_v18, %v61_v4  ;;  %vm1988_vm4 = vcmp.eq.s32.totalorder %v218_v27, 1 }
  0x2e   :  { %v114_v33 = vsel %vm59_vm0, %v112_v25, %v113_v26  ;;  %v144_v34 = vsel %vm1957_vm2, %v1912_v0, %v112_v25  ;;  %s337_s9 = scalar_select %p336_p2, 1, 0  ;;  %v117_v35 = vrot.slane %v87_v30, 7  ;;  %v118_v36 = vrot.slane %v88_v31, 7 }
  0x2f   :  { %v145_v37 = vsel %vm1957_vm2, %v1914_v1, %v114_v33  ;;  %v172_v38 = vrot.slane %v144_v34, 7  ;;  %v278_v40 = vstv %s277_s8  ;;  %s397_s10 = scalar_select %p396_p3, 1, 0  ;;  %v115_v44 = vrot.slane %v86_v32, 7 }
  0x30   :  { %v173_v41 = vrot.slane %v145_v37, 7  ;;  %v338_v42 = vstv %s337_s9  ;;  %s1996_s11 = scalar_select %p456_p4, 1, 0  ;;  %v119_v43 = vsel %vm59_vm0, %v117_v35, %v118_v36  ;;  %vm2002_vm5 = vcmp.eq.s32.totalorder %v278_v40, 1 }
  0x31   :  { %v204_v45 = vsel %vm1966_vm3, %v1912_v0, %v172_v38  ;;  %v398_v47 = vstv %s397_s10  ;;  %v147_v48 = vsel %vm1957_vm2, %v1918_v2, %v117_v35  ;;  %vm2010_vm6 = vcmp.eq.s32.totalorder %v338_v42, 1  ;;  %p921_p5 = scmp.eq.s32.totalorder %s2184_s13, 1  ;;  %p969_p6 = scmp.eq.s32.totalorder %s2184_s13, 2 }
  0x32   :  { %v174_v49 = vsel %vm59_vm0, %v172_v38, %v173_v41  ;;  %v232_v50 = vrot.slane %v204_v45, 7  ;;  %vm2014_vm7 = vcmp.eq.s32.totalorder %v398_v47, 1  ;;  %v458_v55 = vstv %s1996_s11  ;;  %p1029_p7 = scmp.eq.s32.totalorder %s2184_s13, 3  ;;  %p1089_p8 = scmp.eq.s32.totalorder %s2184_s13, 4 }
  0x33   :  { %v205_v54 = vsel %vm1966_vm3, %v1914_v1, %v174_v49  ;;  %v148_v56 = vsel %vm1957_vm2, %v1924_v5, %v119_v43  ;;  %v177_v57 = vrot.slane %v147_v48, 7  ;;  %v116_v61 = vsel %vm59_vm0, %v113_v26, %v115_v44  ;;  %s2274_s14 = scalar_select %p921_p5, 1, 0 }
  0x34   :  { %v233_v58 = vrot.slane %v205_v54, 7  ;;  %v264_v59 = vsel %vm1988_vm4, %v1912_v0, %v232_v50  ;;  %v178_v60 = vrot.slane %v148_v56, 7  ;;  %v146_v3 = vsel %vm1957_vm2, %v1947_v18, %v116_v61  ;;  %v2103_v61 = vld [vmem:[#allocation4 + $0x40] sm:$0xff]  ;;  %s970_s15 = scalar_select %p969_p6, 1, 0 }
  0x35   :  { %v292_v62 = vrot.slane %v264_v59, 7  ;;  %v207_v63 = vsel %vm1966_vm3, %v1918_v2, %v177_v57  ;;  %v89_v4 = vsel %vm1941_vm1, %v2018_v53, %v64_v7  ;;  %v175_v13 = vrot.slane %v146_v3, 7  ;;  %s2362_s16 = scalar_select %p1029_p7, 1, 0 }
  0x36   :  { %v234_v6 = vsel %vm59_vm0, %v232_v50, %v233_v58  ;;  %v179_v9 = vsel %vm59_vm0, %v177_v57, %v178_v60  ;;  %v237_v12 = vrot.slane %v207_v63, 7  ;;  %v120_v24 = vrot.slane %v89_v4, 7  ;;  %s2375_s17 = scalar_select %p1089_p8, 1, 0 }
  0x37   :  { %v265_v17 = vsel %vm1988_vm4, %v1914_v1, %v234_v6  ;;  %v324_v21 = vsel %vm2002_vm5, %v1912_v0, %v292_v62  ;;  %v208_v22 = vsel %vm1966_vm3, %v1924_v5, %v179_v9  ;;  %v176_v31 = vsel %vm59_vm0, %v173_v41, %v175_v13  ;;  %p1149_p9 = scmp.eq.s32.totalorder %s2184_s13, 5  ;;  %p1209_p10 = scmp.eq.s32.totalorder %s2184_s13, 6 }
  0x38   :  { %v293_v7 = vrot.slane %v265_v17, 7  ;;  %v352_v25 = vrot.slane %v324_v21, 7  ;;  %v238_v26 = vrot.slane %v208_v22, 7  ;;  %v267_v27 = vsel %vm1988_vm4, %v1918_v2, %v237_v12  ;;  %p1269_p11 = scmp.eq.s32.totalorder %s2184_s13, 7  ;;  %p1329_p12 = scmp.eq.s32.totalorder %s2184_s13, 8 }
  0x39   :  { %v297_v30 = vrot.slane %v267_v27, 7  ;;  %v121_v32 = vsel %vm59_vm0, %v118_v36, %v120_v24  ;;  %v68_v33 = vsel %vm59_vm0, %v66_v14, %v67_v19  ;;  %v206_v38 = vsel %vm1966_vm3, %v1947_v18, %v176_v31  ;;  %s1150_s18 = scalar_select %p1149_p9, 1, 0 }
  0x3a   :  { %v294_v34 = vsel %vm59_vm0, %v292_v62, %v293_v7  ;;  %v384_v35 = vsel %vm2010_vm6, %v1912_v0, %v352_v25  ;;  %v239_v37 = vsel %vm59_vm0, %v237_v12, %v238_v26  ;;  %vm2080_vm8 = vcmp.eq.s32.totalorder %v458_v55, 1  ;;  %s1210_s19 = scalar_select %p1209_p10, 1, 0 }
  0x3b   :  { %v325_v36 = vsel %vm2002_vm5, %v1914_v1, %v294_v34  ;;  %v412_v40 = vrot.slane %v384_v35, 7  ;;  %v268_v41 = vsel %vm1988_vm4, %v1924_v5, %v239_v37  ;;  %v327_v42 = vsel %vm2002_vm5, %v1918_v2, %v297_v30  ;;  %s1270_s20 = scalar_select %p1269_p11, 1, 0 }
  0x3c   :  { %v353_v43 = vrot.slane %v325_v36, 7  ;;  %v298_v45 = vrot.slane %v268_v41, 7  ;;  %v357_v47 = vrot.slane %v327_v42, 7  ;;  %v235_v48 = vrot.slane %v206_v38, 7  ;;  %s2464_s21 = scalar_select %p1329_p12, 1, 0 }
  0x3d   :  { %v444_v49 = vsel %vm2014_vm7, %v1912_v0, %v412_v40  ;;  %v149_v50 = vsel %vm1957_vm2, %v2018_v53, %v121_v32  ;;  %v90_v54 = vsel %vm1941_vm1, %v1928_v8, %v66_v14  ;;  %v91_v55 = vsel %vm1941_vm1, %v1931_v10, %v68_v33  ;;  %p508_p13 = scmp.eq.s32.totalorder %s2807_s22, 1  ;;  %p1381_p0 = scmp.eq.s32.totalorder %s2884_s24, 1 }
  0x3e   :  { %v354_v56 = vsel %vm59_vm0, %v352_v25, %v353_v43  ;;  %v472_v57 = vrot.slane %v444_v49, 7  ;;  %v299_v59 = vsel %vm59_vm0, %v297_v30, %v298_v45  ;;  %v387_v0 = vsel %vm2010_vm6, %v1918_v2, %v357_v47  ;;  %p552_p1 = scmp.eq.s32.totalorder %s2807_s22, 2  ;;  %p1425_p2 = scmp.eq.s32.totalorder %s2884_s24, 2 }
  0x3f   :  { %v385_v62 = vsel %vm2010_vm6, %v1914_v1, %v354_v56  ;;  %v328_v14 = vsel %vm2002_vm5, %v1924_v5, %v299_v59  ;;  %v417_v63 = vrot.slane %v387_v0, 7  ;;  %v236_v3 = vsel %vm59_vm0, %v233_v58, %v235_v48  ;;  %s509_s23 = scalar_select %p508_p13, 1, 0 }
  0x40   :  { %v413_v4 = vrot.slane %v385_v62, 7  ;;  %v358_v6 = vrot.slane %v328_v14, 7  ;;  %v266_v9 = vsel %vm1988_vm4, %v1947_v18, %v236_v3  ;;  %v180_v12 = vrot.slane %v149_v50, 7  ;;  %s1382_s25 = scalar_select %p1381_p0, 1, 0 }
  0x41   :  { %v447_v13 = vsel %vm2014_vm7, %v1918_v2, %v417_v63  ;;  %v295_v17 = vrot.slane %v266_v9, 7  ;;  %v92_v21 = vsel %vm1941_vm1, %v2103_v61, %v67_v19  ;;  %v122_v22 = vrot.slane %v90_v54, 7  ;;  %s553_s26 = scalar_select %p552_p1, 1, 0 }
  0x42   :  { %v414_v58 = vsel %vm59_vm0, %v412_v40, %v413_v4  ;;  %v359_v24 = vsel %vm59_vm0, %v357_v47, %v358_v6  ;;  %v477_v25 = vrot.slane %v447_v13, 7  ;;  %v181_v27 = vsel %vm59_vm0, %v178_v60, %v180_v12  ;;  %s1426_s27 = scalar_select %p1425_p2, 1, 0 }
  0x43   :  { %v445_v30 = vsel %vm2014_vm7, %v1914_v1, %v414_v58  ;;  %v388_v2 = vsel %vm2010_vm6, %v1924_v5, %v359_v24  ;;  %v296_v31 = vsel %vm59_vm0, %v293_v7, %v295_v17  ;;  %v209_v19 = vsel %vm1966_vm3, %v2018_v53, %v181_v27  ;;  %p596_p3 = scmp.eq.s32.totalorder %s2807_s22, 3  ;;  %p1469_p4 = scmp.eq.s32.totalorder %s2884_s24, 3 }
  0x44   :  { %v473_v32 = vrot.slane %v445_v30, 7  ;;  %v418_v33 = vrot.slane %v388_v2, 7  ;;  %v326_v60 = vsel %vm2002_vm5, %v1947_v18, %v296_v31  ;;  %v240_v34 = vrot.slane %v209_v19, 7  ;;  %p640_p5 = scmp.eq.s32.totalorder %s2807_s22, 4  ;;  %p1513_p6 = scmp.eq.s32.totalorder %s2884_s24, 4 }
  0x45   :  { %v355_v35 = vrot.slane %v326_v60, 7  ;;  %v123_v37 = vrot.slane %v91_v55, 7  ;;  %v125_v38 = vrot.slane %v92_v21, 7  ;;  %v150_v36 = vsel %vm1957_vm2, %v1928_v8, %v122_v22  ;;  %s597_s0 = scalar_select %p596_p3, 1, 0 }
  0x46   :  { %v474_v7 = vsel %vm59_vm0, %v472_v57, %v473_v32  ;;  %v419_v40 = vsel %vm59_vm0, %v417_v63, %v418_v33  ;;  %v241_v41 = vsel %vm59_vm0, %v238_v26, %v240_v34  ;;  %v182_v42 = vrot.slane %v150_v36, 7  ;;  %s1470_s30 = scalar_select %p1469_p4, 1, 0 }
  0x47   :  { %v2148_v47 = vsel %vm2080_vm8, %v1914_v1, %v474_v7  ;;  %v448_v48 = vsel %vm2014_vm7, %v1924_v5, %v419_v40  ;;  %v356_v49 = vsel %vm59_vm0, %v353_v43, %v355_v35  ;;  %v269_v50 = vsel %vm1988_vm4, %v2018_v53, %v241_v41  ;;  %s641_s3 = scalar_select %p640_p5, 1, 0 }
  0x48   :  { %520 = vrot.lane.b32.xlu0 %v2148_v47, %s1865_s12  ;;  %v478_v26 = vrot.slane %v448_v48, 7  ;;  %v386_v1 = vsel %vm2010_vm6, %v1947_v18, %v356_v49  ;;  %v300_v54 = vrot.slane %v269_v50, 7  ;;  %v124_v55 = vsel %vm59_vm0, %v122_v22, %v123_v37  ;;  %s1514_s4 = scalar_select %p1513_p6, 1, 0 }
  0x49   :  { %v415_v56 = vrot.slane %v386_v1, 7  ;;  %v126_v57 = vsel %vm59_vm0, %v123_v37, %v125_v38  ;;  %v151_v43 = vsel %vm1957_vm2, %v1931_v10, %v124_v55  ;;  %v210_v59 = vsel %vm1966_vm3, %v1928_v8, %v182_v42  ;;  %v2218_v38 = vld [vmem:[#allocation4 + $0x58] sm:$0xff]  ;;  %p684_p7 = scmp.eq.s32.totalorder %s2807_s22, 5  ;;  %p1557_p8 = scmp.eq.s32.totalorder %s2884_s24, 5 }
  0x4a   :  { %v479_v0 = vsel %vm59_vm0, %v477_v25, %v478_v26  ;;  %v301_v62 = vsel %vm59_vm0, %v298_v45, %v300_v54  ;;  %v152_v14 = vsel %vm1957_vm2, %v2103_v61, %v126_v57  ;;  %v183_v63 = vrot.slane %v151_v43, 7  ;;  %p728_p9 = scmp.eq.s32.totalorder %s2807_s22, 6  ;;  %p1601_p10 = scmp.eq.s32.totalorder %s2884_s24, 6 }
  0x4b   :  { %v2178_v3 = vsel %vm2080_vm8, %v1924_v5, %v479_v0  ;;  %v416_v9 = vsel %vm59_vm0, %v413_v4, %v415_v56  ;;  %v329_v12 = vsel %vm2002_vm5, %v2018_v53, %v301_v62  ;;  %v185_v13 = vrot.slane %v152_v14, 7  ;;  %s685_s1 = scalar_select %p684_p7, 1, 0 }
  0x4c   :  { %524 = vrot.lane.b32.xlu1 %v2178_v3, %s1865_s12  ;;  %v446_v45 = vsel %vm2014_vm7, %v1947_v18, %v416_v9  ;;  %v360_v17 = vrot.slane %v329_v12, 7  ;;  %v184_v5 = vsel %vm59_vm0, %v182_v42, %v183_v63  ;;  %v242_v21 = vrot.slane %v210_v59, 7  ;;  %s1558_s5 = scalar_select %p1557_p8, 1, 0 }
  0x4d   :  { %v475_v22 = vrot.slane %v446_v45, 7  ;;  %v186_v4 = vsel %vm59_vm0, %v183_v63, %v185_v13  ;;  %v211_v58 = vsel %vm1966_vm3, %v1931_v10, %v184_v5  ;;  %v71_v24 = vsel %vm59_vm0, %v69_v20, %v70_v28  ;;  %v2285_v5 = vld [vmem:[#allocation4 + $0x60] sm:$0xff]  ;;  %s729_s6 = scalar_select %p728_p9, 1, 0 }
  0x4e   :  { %v361_v25 = vsel %vm59_vm0, %v358_v6, %v360_v17  ;;  %v212_v27 = vsel %vm1966_vm3, %v2103_v61, %v186_v4  ;;  %v243_v30 = vrot.slane %v211_v58, 7  ;;  %v270_v2 = vsel %vm1988_vm4, %v1928_v8, %v242_v21  ;;  %s1602_s7 = scalar_select %p1601_p10, 1, 0 }
  0x4f   :  { %v476_v31 = vsel %vm59_vm0, %v473_v32, %v475_v22  ;;  %v389_v19 = vsel %vm2010_vm6, %v2018_v53, %v361_v25  ;;  %v245_v60 = vrot.slane %v212_v27, 7  ;;  %v302_v34 = vrot.slane %v270_v2, 7  ;;  %p772_p11 = scmp.eq.s32.totalorder %s2807_s22, 7  ;;  %p1645_p12 = scmp.eq.s32.totalorder %s2884_s24, 7 }
  0x50   :  { %v2215_v6 = vsel %vm2080_vm8, %v1947_v18, %v476_v31  ;;  %v420_v35 = vrot.slane %v389_v19, 7  ;;  %v244_v37 = vsel %vm59_vm0, %v242_v21, %v243_v30  ;;  %v93_v32 = vsel %vm1941_vm1, %v1933_v11, %v69_v20  ;;  %p816_p13 = scmp.eq.s32.totalorder %s2807_s22, 8  ;;  %s1866_s11 = smov 120  }
  0x51   :  { %522 = vrot.lane.b32.xlu0 %v2215_v6, %s1865_s12  ;;  %v246_v36 = vsel %vm59_vm0, %v243_v30, %v245_v60  ;;  %v271_v18 = vsel %vm1988_vm4, %v1931_v10, %v244_v37  ;;  %v330_v7 = vsel %vm2002_vm5, %v1928_v8, %v302_v34  ;;  %v94_v40 = vsel %vm1941_vm1, %v1939_v15, %v71_v24  ;;  %s773_s8 = scalar_select %p772_p11, 1, 0 }
  0x52   :  { %v421_v41 = vsel %vm59_vm0, %v418_v33, %v420_v35  ;;  %v272_v20 = vsel %vm1988_vm4, %v2103_v61, %v246_v36  ;;  %v303_v42 = vrot.slane %v271_v18, 7  ;;  %v362_v48 = vrot.slane %v330_v7, 7  ;;  %s1646_s9 = scalar_select %p1645_p12, 1, 0 }
  0x53   :  { %v449_v49 = vsel %vm2014_vm7, %v2018_v53, %v421_v41  ;;  %v305_v50 = vrot.slane %v272_v20, 7  ;;  %v95_v1 = vsel %vm1941_vm1, %v2218_v38, %v70_v28  ;;  %v127_v54 = vrot.slane %v93_v32, 7  ;;  %v2305_v32 = vld [vmem:[#allocation4 + $0x68] sm:$0xff]  ;;  %s817_s10 = scalar_select %p816_p13, 1, 0 }
  0x54   :  { %v480_v33 = vrot.slane %v449_v49, 7  ;;  %v304_v55 = vsel %vm59_vm0, %v302_v34, %v303_v42  ;;  %v390_v56 = vsel %vm2010_vm6, %v1928_v8, %v362_v48  ;;  %v128_v57 = vrot.slane %v94_v40, 7  ;;  %p1689_p0 = scmp.eq.s32.totalorder %s2884_s24, 8  ;;  %s1867_s13 = smov [#allocation7]  }
  0x55   :  { %v306_v43 = vsel %vm59_vm0, %v303_v42, %v305_v50  ;;  %v331_v59 = vsel %vm2002_vm5, %v1931_v10, %v304_v55  ;;  %v422_v0 = vrot.slane %v390_v56, 7  ;;  %v130_v16 = vrot.slane %v95_v1, 7 }
  0x56   :  { %v481_v28 = vsel %vm59_vm0, %v478_v26, %v480_v33  ;;  %v332_v62 = vsel %vm2002_vm5, %v2103_v61, %v306_v43  ;;  %v363_v14 = vrot.slane %v331_v59, 7  ;;  %v129_v63 = vsel %vm59_vm0, %v127_v54, %v128_v57 }
  0x57   :  { %v2266_v9 = vsel %vm2080_vm8, %v2018_v53, %v481_v28  ;;  %v365_v12 = vrot.slane %v332_v62, 7  ;;  %v450_v13 = vsel %vm2014_vm7, %v1928_v8, %v422_v0  ;;  %v131_v45 = vsel %vm59_vm0, %v128_v57, %v130_v16  ;;  %v2334_v57 = vld [vmem:[#allocation4 + $0x70] sm:$0xff] }
  0x58   :  { %526 = vrot.lane.b32.xlu1 %v2266_v9, %s1865_s12  ;;  %v364_v26 = vsel %vm59_vm0, %v362_v48, %v363_v14  ;;  %v482_v17 = vrot.slane %v450_v13, 7  ;;  %v153_v53 = vsel %vm1957_vm2, %v1933_v11, %v127_v54  ;;  %v154_v8 = vsel %vm1957_vm2, %v1939_v15, %v129_v63 }
  0x59   :  { %v366_v21 = vsel %vm59_vm0, %v363_v14, %v365_v12  ;;  %v391_v22 = vsel %vm2010_vm6, %v1931_v10, %v364_v26  ;;  %v155_v4 = vsel %vm1957_vm2, %v2218_v38, %v131_v45  ;;  %v187_v58 = vrot.slane %v153_v53, 7 }
  0x5a   :  { %v392_v24 = vsel %vm2010_vm6, %v2103_v61, %v366_v21  ;;  %v423_v25 = vrot.slane %v391_v22, 7  ;;  %v188_v27 = vrot.slane %v154_v8, 7  ;;  %v190_v30 = vrot.slane %v155_v4, 7 }
  0x5b   :  { %v425_v2 = vrot.slane %v392_v24, 7  ;;  %v213_v31 = vsel %vm1966_vm3, %v1933_v11, %v187_v58  ;;  %v923_v19 = vstv %s2274_s14  ;;  %v933_v60 = vrot.slane %v2285_v5, 7  ;;  %s1779_s14 = sshll.u32 %s1867_s13, 4  ;;  %s1780_s14 = int_to_ptr.vmem [resolvable:$true] %s1779_s14 }
  0x5c   :  { %v424_v23 = vsel %vm59_vm0, %v422_v0, %v423_v25  ;;  %v189_v34 = vsel %vm59_vm0, %v187_v58, %v188_v27  ;;  %v191_v35 = vsel %vm59_vm0, %v188_v27, %v190_v30  ;;  %v247_v37 = vrot.slane %v213_v31, 7  ;;  %p1838_p2 = scmp.lt.s32.totalorder %s1780_s14, %s1780_s14 }
  0x5d   :  { %v426_v36 = vsel %vm59_vm0, %v423_v25, %v425_v2  ;;  %v451_v18 = vsel %vm2014_vm7, %v1931_v10, %v424_v23  ;;  %v214_v7 = vsel %vm1966_vm3, %v1939_v15, %v189_v34  ;;  %v215_v40 = vsel %vm1966_vm3, %v2218_v38, %v191_v35 }
  0x5e   :  { %v452_v41 = vsel %vm2014_vm7, %v2103_v61, %v426_v36  ;;  %v483_v20 = vrot.slane %v451_v18, 7  ;;  %v248_v42 = vrot.slane %v214_v7, 7  ;;  %v250_v48 = vrot.slane %v215_v40, 7 }
  0x5f   :  { %v485_v49 = vrot.slane %v452_v41, 7  ;;  %v273_v50 = vsel %vm1988_vm4, %v1933_v11, %v247_v37  ;;  %vm2325_vm9 = vcmp.eq.s32.totalorder %v923_v19, 1  ;;  %v934_v29 = vrot.slane %v2305_v32, 7 }
  0x60   :  { %v484_v54 = vsel %vm59_vm0, %v482_v17, %v483_v20  ;;  %v249_v33 = vsel %vm59_vm0, %v247_v37, %v248_v42  ;;  %v251_v55 = vsel %vm59_vm0, %v248_v42, %v250_v48  ;;  %v307_v56 = vrot.slane %v273_v50, 7 }
  0x61   :  { %v486_v43 = vsel %vm59_vm0, %v483_v20, %v485_v49  ;;  %v2342_v59 = vsel %vm2080_vm8, %v1931_v10, %v484_v54  ;;  %v274_v0 = vsel %vm1988_vm4, %v1939_v15, %v249_v33  ;;  %v275_v16 = vsel %vm1988_vm4, %v2218_v38, %v251_v55 }
  0x62   :  { %v2353_v28 = vsel %vm2080_vm8, %v2103_v61, %v486_v43  ;;  %528 = vrot.lane.b32.xlu0 %v2342_v59, %s1865_s12  ;;  %v308_v62 = vrot.slane %v274_v0, 7  ;;  %v310_v14 = vrot.slane %v275_v16, 7  ;;  %v333_v10 = vsel %vm2002_vm5, %v1933_v11, %v307_v56 }
  0x63   :  { %530 = vrot.lane.b32.xlu1 %v2353_v28, %s1865_s12  ;;  %v367_v39 = vrot.slane %v333_v10, 7  ;;  %v935_v63 = vsel %vm59_vm0, %v933_v60, %v934_v29  ;;  %v957_v61 = vsel %vm2325_vm9, %v2285_v5, %v933_v60  ;;  %v959_v12 = vsel %vm2325_vm9, %v2334_v57, %v934_v29 }
  0x64   :  { %v309_v13 = vsel %vm59_vm0, %v307_v56, %v308_v62  ;;  %v311_v45 = vsel %vm59_vm0, %v308_v62, %v310_v14  ;;  %v958_v26 = vsel %vm2325_vm9, %v2305_v32, %v935_v63  ;;  %v971_v17 = vstv %s970_s15  ;;  %s1833_s15 = scalar_lea.vmem %s1780_s14, 2048 }
  0x65   :  { %v334_v53 = vsel %vm2002_vm5, %v1939_v15, %v309_v13  ;;  %v335_v8 = vsel %vm2002_vm5, %v2218_v38, %v311_v45  ;;  %v393_v21 = vsel %vm2010_vm6, %v1933_v11, %v367_v39  ;;  %vm2391_vm10 = vcmp.eq.s32.totalorder %v971_v17, 1  ;;  %p1834_p1 = scmp.ne.s32.totalorder %s1780_s14, %s1833_s15  ;;  %p1839_p3 = scmp.lt.s32.totalorder %s1833_s15, %s1833_s15 }
  0x66   :  { %v368_v4 = vrot.slane %v334_v53, 7  ;;  %v370_v58 = vrot.slane %v335_v8, 7  ;;  %v427_v24 = vrot.slane %v393_v21, 7  ;;  %v985_v25 = vrot.slane %v957_v61, 7  ;;  %v2488_v21 = vld [vmem:[#allocation4 + $0x78] sm:$0xff] }
  0x67   :  { %v986_v27 = vrot.slane %v958_v26, 7  ;;  %v988_v30 = vrot.slane %v959_v12, 7  ;;  %v1031_v2 = vstv %s2362_s16  ;;  %v1091_v31 = vstv %s2375_s17  ;;  %p1840_p4 = por %p1839_p3, %p1838_p2 }
  0x68   :  { %v369_v46 = vsel %vm59_vm0, %v367_v39, %v368_v4  ;;  %v371_v19 = vsel %vm59_vm0, %v368_v4, %v370_v58  ;;  %v453_v60 = vsel %vm2014_vm7, %v1933_v11, %v427_v24  ;;  %v1017_v23 = vsel %vm2391_vm10, %v2285_v5, %v985_v25 }
  0x69   :  { %v394_v34 = vsel %vm2010_vm6, %v1939_v15, %v369_v46  ;;  %v395_v35 = vsel %vm2010_vm6, %v2218_v38, %v371_v19  ;;  %v487_v37 = vrot.slane %v453_v60, 7  ;;  %v987_v36 = vsel %vm59_vm0, %v985_v25, %v986_v27  ;;  %v2493_v25 = vld [vmem:[#allocation4 + $0x80] sm:$0xff]  ;;  %p1841_p5 = pnand %p1840_p4, %p1834_p1 }
  0x6a   :  { %v428_v18 = vrot.slane %v394_v34, 7  ;;  %v430_v7 = vrot.slane %v395_v35, 7  ;;  %v989_v11 = vsel %vm59_vm0, %v986_v27, %v988_v30  ;;  %v1018_v40 = vsel %vm2391_vm10, %v2305_v32, %v987_v36  ;;  %v2495_v27 = vld [vmem:[#allocation4 + $0x90] sm:$0xff]  ;;  %v2510_v34 = vld [vmem:[#allocation4 + $0x88] sm:$0xff] }
  0x6b   :  { %v1019_v41 = vsel %vm2391_vm10, %v2334_v57, %v989_v11  ;;  %vm2422_vm11 = vcmp.eq.s32.totalorder %v1031_v2, 1  ;;  %v1045_v20 = vrot.slane %v1017_v23, 7  ;;  %v1046_v42 = vrot.slane %v1018_v40, 7 }
  0x6c   :  { %v429_v48 = vsel %vm59_vm0, %v427_v24, %v428_v18  ;;  %v431_v49 = vsel %vm59_vm0, %v428_v18, %v430_v7  ;;  %v1048_v50 = vrot.slane %v1019_v41, 7  ;;  %vm2430_vm12 = vcmp.eq.s32.totalorder %v1091_v31, 1 }
  0x6d   :  { %v454_v54 = vsel %vm2014_vm7, %v1939_v15, %v429_v48  ;;  %v455_v33 = vsel %vm2014_vm7, %v2218_v38, %v431_v49  ;;  %v1047_v55 = vsel %vm59_vm0, %v1045_v20, %v1046_v42  ;;  %v1077_v56 = vsel %vm2422_vm11, %v2285_v5, %v1045_v20 }
  0x6e   :  { %v488_v43 = vrot.slane %v454_v54, 7  ;;  %v490_v0 = vrot.slane %v455_v33, 7  ;;  %v1049_v16 = vsel %vm59_vm0, %v1046_v42, %v1048_v50  ;;  %v1078_v62 = vsel %vm2422_vm11, %v2305_v32, %v1047_v55 }
  0x6f   :  { %v1079_v52 = vsel %vm2422_vm11, %v2334_v57, %v1049_v16  ;;  %v1105_v14 = vrot.slane %v1077_v56, 7  ;;  %v1106_v10 = vrot.slane %v1078_v62, 7  ;;  %v1151_v39 = vstv %s1150_s18 }
  0x70   :  { %v491_v63 = vsel %vm59_vm0, %v488_v43, %v490_v0  ;;  %v489_v61 = vsel %vm59_vm0, %v487_v37, %v488_v43  ;;  %v1108_v12 = vrot.slane %v1079_v52, 7  ;;  %vm2458_vm13 = vcmp.eq.s32.totalorder %v1151_v39, 1 }
  0x71   :  { %v2469_v45 = vsel %vm2080_vm8, %v2218_v38, %v491_v63  ;;  %v2474_v26 = vsel %vm2080_vm8, %v1939_v15, %v489_v61  ;;  %v1107_v17 = vsel %vm59_vm0, %v1105_v14, %v1106_v10  ;;  %v1137_v53 = vsel %vm2430_vm12, %v2285_v5, %v1105_v14  ;;  %v2547_v14 = vld [vmem:[#allocation4 + $0x98] sm:$0xff] }
  0x72   :  { %534 = vrot.lane.b32.xlu1 %v2469_v45, %s1865_s12  ;;  %532 = vrot.lane.b32.xlu0 %v2474_v26, %s1865_s12  ;;  %v1109_v38 = vsel %vm59_vm0, %v1106_v10, %v1108_v12  ;;  %v1138_v15 = vsel %vm2430_vm12, %v2305_v32, %v1107_v17  ;;  %v1165_v44 = vrot.slane %v1137_v53, 7  ;;  %v1211_v8 = vstv %s1210_s19 }
  0x73   :  { %v1139_v4 = vsel %vm2430_vm12, %v2334_v57, %v1109_v38  ;;  %v1166_v58 = vrot.slane %v1138_v15, 7  ;;  %v1271_v24 = vstv %s1270_s20  ;;  %vm2500_vm14 = vcmp.eq.s32.totalorder %v1211_v8, 1 }
  0x74   :  { %v1168_v30 = vrot.slane %v1139_v4, 7  ;;  %v1197_v2 = vsel %vm2458_vm13, %v2285_v5, %v1165_v44  ;;  %v1331_v46 = vstv %s2464_s21  ;;  %vm2506_vm15 = vcmp.eq.s32.totalorder %v1271_v24, 1 }
  0x75   :  { %v1167_v19 = vsel %vm59_vm0, %v1165_v44, %v1166_v58  ;;  %v1225_v60 = vrot.slane %v1197_v2, 7  ;;  %v936_v35 = vrot.slane %v2488_v21, 7  ;;  %v937_v18 = vrot.slane %v2493_v25, 7 }
  0x76   :  { %v1169_v37 = vsel %vm59_vm0, %v1166_v58, %v1168_v30  ;;  %v1198_v36 = vsel %vm2458_vm13, %v2305_v32, %v1167_v19  ;;  %v939_v7 = vrot.slane %v2495_v27, 7  ;;  %vm2525_vm1 = vcmp.eq.s32.totalorder %v1331_v46, 1 }
  0x77   :  { %v1199_v11 = vsel %vm2458_vm13, %v2334_v57, %v1169_v37  ;;  %v1226_v40 = vrot.slane %v1198_v36, 7  ;;  %v1257_v41 = vsel %vm2500_vm14, %v2285_v5, %v1225_v60  ;;  %v960_v42 = vsel %vm2325_vm9, %v2488_v21, %v936_v35 }
  0x78   :  { %v1228_v48 = vrot.slane %v1199_v11, 7  ;;  %v1285_v49 = vrot.slane %v1257_v41, 7  ;;  %v938_v50 = vsel %vm59_vm0, %v936_v35, %v937_v18  ;;  %v962_v54 = vsel %vm2325_vm9, %v2510_v34, %v937_v18  ;;  %v2578_v11 = vld [vmem:[#allocation4 + $0xa0] sm:$0xff] }
  0x79   :  { %v1227_v33 = vsel %vm59_vm0, %v1225_v60, %v1226_v40  ;;  %v961_v55 = vsel %vm2325_vm9, %v2493_v25, %v938_v50  ;;  %v990_v56 = vrot.slane %v960_v42, 7  ;;  %v993_v43 = vrot.slane %v962_v54, 7 }
  0x7a   :  { %v1229_v0 = vsel %vm59_vm0, %v1226_v40, %v1228_v48  ;;  %v1258_v16 = vsel %vm2500_vm14, %v2305_v32, %v1227_v33  ;;  %v1317_v62 = vsel %vm2506_vm15, %v2285_v5, %v1285_v49  ;;  %v991_v52 = vrot.slane %v961_v55, 7 }
  0x7b   :  { %v1259_v10 = vsel %vm2500_vm14, %v2334_v57, %v1229_v0  ;;  %v1286_v39 = vrot.slane %v1258_v16, 7  ;;  %v1345_v63 = vrot.slane %v1317_v62, 7  ;;  %v1020_v61 = vsel %vm2391_vm10, %v2488_v21, %v990_v56 }
  0x7c   :  { %v1288_v12 = vrot.slane %v1259_v10, 7  ;;  %v992_v17 = vsel %vm59_vm0, %v990_v56, %v991_v52  ;;  %v994_v53 = vsel %vm59_vm0, %v991_v52, %v993_v43  ;;  %v1050_v38 = vrot.slane %v1020_v61, 7 }
  0x7d   :  { %v1287_v5 = vsel %vm59_vm0, %v1285_v49, %v1286_v39  ;;  %v1021_v15 = vsel %vm2391_vm10, %v2493_v25, %v992_v17  ;;  %v1022_v44 = vsel %vm2391_vm10, %v2510_v34, %v994_v53  ;;  %v940_v8 = vrot.slane %v2547_v14, 7 }
  0x7e   :  { %v1289_v4 = vsel %vm59_vm0, %v1286_v39, %v1288_v12  ;;  %v1318_v58 = vsel %vm2506_vm15, %v2305_v32, %v1287_v5  ;;  %v1051_v24 = vrot.slane %v1021_v15, 7  ;;  %v1053_v30 = vrot.slane %v1022_v44, 7 }
  0x7f   :  { %v1319_v2 = vsel %vm2506_vm15, %v2334_v57, %v1289_v4  ;;  %v1346_v46 = vrot.slane %v1318_v58, 7  ;;  %v1080_v19 = vsel %vm2422_vm11, %v2488_v21, %v1050_v38  ;;  %v941_v60 = vsel %vm59_vm0, %v939_v7, %v940_v8 }
  0x80   :  { %v1348_v35 = vrot.slane %v1319_v2, 7  ;;  %v1052_v37 = vsel %vm59_vm0, %v1050_v38, %v1051_v24  ;;  %v1054_v36 = vsel %vm59_vm0, %v1051_v24, %v1053_v30  ;;  %v1110_v18 = vrot.slane %v1080_v19, 7  ;;  %v2638_v24 = vld [vmem:[#allocation4 + $0xa8] sm:$0xff]  ;;  %v2640_v30 = vld [vmem:[#allocation4 + $0xb0] sm:$0xff] }
  0x81   :  { %v1347_v40 = vsel %vm59_vm0, %v1345_v63, %v1346_v46  ;;  %v1081_v41 = vsel %vm2422_vm11, %v2493_v25, %v1052_v37  ;;  %v1082_v42 = vsel %vm2422_vm11, %v2510_v34, %v1054_v36  ;;  %v963_v48 = vsel %vm2325_vm9, %v2495_v27, %v939_v7 }
  0x82   :  { %v1349_v49 = vsel %vm59_vm0, %v1346_v46, %v1348_v35  ;;  %v2594_v50 = vsel %vm2525_vm1, %v2305_v32, %v1347_v40  ;;  %v1111_v54 = vrot.slane %v1081_v41, 7  ;;  %v1113_v33 = vrot.slane %v1082_v42, 7 }
  0x83   :  { %v2599_v55 = vsel %vm2525_vm1, %v2334_v57, %v1349_v49  ;;  %1393 = vrot.lane.b32.xlu0 %v2594_v50, %s1865_s12  ;;  %v1140_v7 = vsel %vm2430_vm12, %v2488_v21, %v1110_v18  ;;  %v964_v56 = vsel %vm2325_vm9, %v2547_v14, %v941_v60  ;;  %v965_v32 = vsel %vm2325_vm9, %v2578_v11, %v940_v8 }
  0x84   :  { %1395 = vrot.lane.b32.xlu1 %v2599_v55, %s1865_s12  ;;  %v1112_v57 = vsel %vm59_vm0, %v1110_v18, %v1111_v54  ;;  %v1114_v43 = vsel %vm59_vm0, %v1111_v54, %v1113_v33  ;;  %v1170_v0 = vrot.slane %v1140_v7, 7  ;;  %v995_v16 = vrot.slane %v963_v48, 7 }
  0x85   :  { %v1141_v62 = vsel %vm2430_vm12, %v2493_v25, %v1112_v57  ;;  %v1142_v52 = vsel %vm2430_vm12, %v2510_v34, %v1114_v43  ;;  %v996_v10 = vrot.slane %v964_v56, 7  ;;  %v998_v39 = vrot.slane %v965_v32, 7 }
  0x86   :  { %v1171_v63 = vrot.slane %v1141_v62, 7  ;;  %v1173_v61 = vrot.slane %v1142_v52, 7  ;;  %v1200_v12 = vsel %vm2458_vm13, %v2488_v21, %v1170_v0  ;;  %v1023_v17 = vsel %vm2391_vm10, %v2495_v27, %v995_v16 }
  0x87   :  { %v1230_v53 = vrot.slane %v1200_v12, 7  ;;  %v997_v38 = vsel %vm59_vm0, %v995_v16, %v996_v10  ;;  %v999_v5 = vsel %vm59_vm0, %v996_v10, %v998_v39  ;;  %v1055_v15 = vrot.slane %v1023_v17, 7 }
  0x88   :  { %v1172_v44 = vsel %vm59_vm0, %v1170_v0, %v1171_v63  ;;  %v1174_v8 = vsel %vm59_vm0, %v1171_v63, %v1173_v61  ;;  %v1024_v4 = vsel %vm2391_vm10, %v2547_v14, %v997_v38  ;;  %v1025_v58 = vsel %vm2391_vm10, %v2578_v11, %v999_v5 }
  0x89   :  { %v1201_v2 = vsel %vm2458_vm13, %v2493_v25, %v1172_v44  ;;  %v1202_v46 = vsel %vm2458_vm13, %v2510_v34, %v1174_v8  ;;  %v1260_v19 = vsel %vm2500_vm14, %v2488_v21, %v1230_v53  ;;  %v1056_v60 = vrot.slane %v1024_v4, 7 }
  0x8a   :  { %v1231_v35 = vrot.slane %v1201_v2, 7  ;;  %v1233_v37 = vrot.slane %v1202_v46, 7  ;;  %v1290_v36 = vrot.slane %v1260_v19, 7  ;;  %v1058_v18 = vrot.slane %v1025_v58, 7 }
  0x8b   :  { %v1057_v40 = vsel %vm59_vm0, %v1055_v15, %v1056_v60  ;;  %v1083_v41 = vsel %vm2422_vm11, %v2495_v27, %v1055_v15  ;;  %v942_v42 = vrot.slane %v2638_v24, 7  ;;  %v943_v48 = vrot.slane %v2640_v30, 7 }
  0x8c   :  { %v1232_v49 = vsel %vm59_vm0, %v1230_v53, %v1231_v35  ;;  %v1234_v54 = vsel %vm59_vm0, %v1231_v35, %v1233_v37  ;;  %v1320_v33 = vsel %vm2506_vm15, %v2488_v21, %v1290_v36  ;;  %v1059_v7 = vsel %vm59_vm0, %v1056_v60, %v1058_v18  ;;  %v2684_v53 = vld [vmem:[#allocation4 + $0xb8] sm:$0xff] }
  0x8d   :  { %v1261_v56 = vsel %vm2500_vm14, %v2493_v25, %v1232_v49  ;;  %v1262_v32 = vsel %vm2500_vm14, %v2510_v34, %v1234_v54  ;;  %v1350_v57 = vrot.slane %v1320_v33, 7  ;;  %v1084_v43 = vsel %vm2422_vm11, %v2547_v14, %v1057_v40 }
  0x8e   :  { %v1291_v0 = vrot.slane %v1261_v56, 7  ;;  %v1293_v16 = vrot.slane %v1262_v32, 7  ;;  %v1085_v21 = vsel %vm2422_vm11, %v2578_v11, %v1059_v7  ;;  %v1115_v62 = vrot.slane %v1083_v41, 7 }
  0x8f   :  { %v1116_v52 = vrot.slane %v1084_v43, 7  ;;  %v1118_v10 = vrot.slane %v1085_v21, 7  ;;  %v944_v39 = vsel %vm59_vm0, %v942_v42, %v943_v48  ;;  %v966_v63 = vsel %vm2325_vm9, %v2638_v24, %v942_v42 }
  0x90   :  { %v1292_v61 = vsel %vm59_vm0, %v1290_v36, %v1291_v0  ;;  %v1294_v12 = vsel %vm59_vm0, %v1291_v0, %v1293_v16  ;;  %v1143_v17 = vsel %vm2430_vm12, %v2495_v27, %v1115_v62  ;;  %v967_v38 = vsel %vm2325_vm9, %v2640_v30, %v944_v39 }
  0x91   :  { %v1321_v5 = vsel %vm2506_vm15, %v2493_v25, %v1292_v61  ;;  %v1322_v15 = vsel %vm2506_vm15, %v2510_v34, %v1294_v12  ;;  %v1117_v44 = vsel %vm59_vm0, %v1115_v62, %v1116_v52  ;;  %v1119_v8 = vsel %vm59_vm0, %v1116_v52, %v1118_v10 }
  0x92   :  { %v1351_v4 = vrot.slane %v1321_v5, 7  ;;  %v1353_v58 = vrot.slane %v1322_v15, 7  ;;  %v1144_v2 = vsel %vm2430_vm12, %v2547_v14, %v1117_v44  ;;  %v1145_v46 = vsel %vm2430_vm12, %v2578_v11, %v1119_v8 }
  0x93   :  { %v1175_v19 = vrot.slane %v1143_v17, 7  ;;  %v1176_v60 = vrot.slane %v1144_v2, 7  ;;  %v1178_v35 = vrot.slane %v1145_v46, 7  ;;  %v968_v37 = vsel %vm2325_vm9, %v2684_v53, %v943_v48 }
  0x94   :  { %v1354_v36 = vsel %vm59_vm0, %v1351_v4, %v1353_v58  ;;  %v1352_v18 = vsel %vm59_vm0, %v1350_v57, %v1351_v4  ;;  %v1000_v40 = vrot.slane %v966_v63, 7  ;;  %v1001_v41 = vrot.slane %v967_v38, 7 }
  0x95   :  { %v2711_v42 = vsel %vm2525_vm1, %v2510_v34, %v1354_v36  ;;  %v2716_v49 = vsel %vm2525_vm1, %v2493_v25, %v1352_v18  ;;  %v1177_v54 = vsel %vm59_vm0, %v1175_v19, %v1176_v60  ;;  %v1179_v1 = vsel %vm59_vm0, %v1176_v60, %v1178_v35 }
  0x96   :  { %1399 = vrot.lane.b32.xlu1 %v2711_v42, %s1865_s12  ;;  %1397 = vrot.lane.b32.xlu0 %v2716_v49, %s1865_s12  ;;  %v1203_v34 = vsel %vm2458_vm13, %v2495_v27, %v1175_v19  ;;  %v1204_v48 = vsel %vm2458_vm13, %v2547_v14, %v1177_v54  ;;  %v1205_v25 = vsel %vm2458_vm13, %v2578_v11, %v1179_v1  ;;  %v1003_v33 = vrot.slane %v968_v37, 7 }
  0x97   :  { %v1235_v7 = vrot.slane %v1203_v34, 7  ;;  %v1236_v56 = vrot.slane %v1204_v48, 7  ;;  %v1238_v32 = vrot.slane %v1205_v25, 7  ;;  %v1002_v57 = vsel %vm59_vm0, %v1000_v40, %v1001_v41 }
  0x98   :  { %v1004_v43 = vsel %vm59_vm0, %v1001_v41, %v1003_v33  ;;  %v1026_v0 = vsel %vm2391_vm10, %v2638_v24, %v1000_v40  ;;  %v1027_v16 = vsel %vm2391_vm10, %v2640_v30, %v1002_v57  ;;  %v510_v23 = vstv %s509_s23 }
  0x99   :  { %v1237_v21 = vsel %vm59_vm0, %v1235_v7, %v1236_v56  ;;  %v1239_v62 = vsel %vm59_vm0, %v1236_v56, %v1238_v32  ;;  %v1263_v52 = vsel %vm2500_vm14, %v2495_v27, %v1235_v7  ;;  %v1028_v10 = vsel %vm2391_vm10, %v2684_v53, %v1004_v43 }
  0x9a   :  { %v1264_v39 = vsel %vm2500_vm14, %v2547_v14, %v1237_v21  ;;  %v1265_v63 = vsel %vm2500_vm14, %v2578_v11, %v1239_v62  ;;  %v1295_v61 = vrot.slane %v1263_v52, 7  ;;  %v1060_v12 = vrot.slane %v1026_v0, 7 }
  0x9b   :  { %v1296_v17 = vrot.slane %v1264_v39, 7  ;;  %v1298_v38 = vrot.slane %v1265_v63, 7  ;;  %v1061_v5 = vrot.slane %v1027_v16, 7  ;;  %v1063_v15 = vrot.slane %v1028_v10, 7 }
  0x9c   :  { %v1323_v44 = vsel %vm2506_vm15, %v2495_v27, %v1295_v61  ;;  %v1086_v22 = vsel %vm2422_vm11, %v2638_v24, %v1060_v12  ;;  %vm2856_vm2 = vcmp.eq.s32.totalorder %v510_v23, 1 }
  0x9d   :  { %v1297_v8 = vsel %vm59_vm0, %v1295_v61, %v1296_v17  ;;  %v1299_v4 = vsel %vm59_vm0, %v1296_v17, %v1298_v38  ;;  %v1355_v58 = vrot.slane %v1323_v44, 7  ;;  %v1062_v2 = vsel %vm59_vm0, %v1060_v12, %v1061_v5 }
  0x9e   :  { %v1324_v46 = vsel %vm2506_vm15, %v2547_v14, %v1297_v8  ;;  %v1325_v19 = vsel %vm2506_vm15, %v2578_v11, %v1299_v4  ;;  %v1064_v27 = vsel %vm59_vm0, %v1061_v5, %v1063_v15  ;;  %v1087_v60 = vsel %vm2422_vm11, %v2640_v30, %v1062_v2 }
  0x9f   :  { %v1356_v35 = vrot.slane %v1324_v46, 7  ;;  %v1358_v37 = vrot.slane %v1325_v19, 7  ;;  %v1088_v36 = vsel %vm2422_vm11, %v2684_v53, %v1064_v27  ;;  %v1120_v18 = vrot.slane %v1086_v22, 7 }
  0xa0   :  { %v1121_v40 = vrot.slane %v1087_v60, 7  ;;  %v1123_v41 = vrot.slane %v1088_v36, 7 }
  0xa1   :  { %v1359_v54 = vsel %vm59_vm0, %v1356_v35, %v1358_v37  ;;  %v1357_v1 = vsel %vm59_vm0, %v1355_v58, %v1356_v35  ;;  %v1146_v34 = vsel %vm2430_vm12, %v2638_v24, %v1120_v18 }
  0xa2   :  { %v2785_v48 = vsel %vm2525_vm1, %v2578_v11, %v1359_v54  ;;  %v2790_v51 = vsel %vm2525_vm1, %v2547_v14, %v1357_v1  ;;  %v1122_v25 = vsel %vm59_vm0, %v1120_v18, %v1121_v40  ;;  %v1124_v33 = vsel %vm59_vm0, %v1121_v40, %v1123_v41 }
  0xa3   :  { %1403 = vrot.lane.b32.xlu1 %v2785_v48, %s1865_s12  ;;  %1401 = vrot.lane.b32.xlu0 %v2790_v51, %s1865_s12  ;;  %v1147_v11 = vsel %vm2430_vm12, %v2640_v30, %v1122_v25  ;;  %v1148_v7 = vsel %vm2430_vm12, %v2684_v53, %v1124_v33  ;;  %v1180_v14 = vrot.slane %v1146_v34, 7 }
  0xa4   :  { %v1181_v56 = vrot.slane %v1147_v11, 7  ;;  %v1183_v32 = vrot.slane %v1148_v7, 7  ;;  %v1383_v7 = vstv %s1382_s25 }
  0xa5   :  { %v1206_v57 = vsel %vm2458_vm13, %v2638_v24, %v1180_v14 }
  0xa6   :  { %v1182_v43 = vsel %vm59_vm0, %v1180_v14, %v1181_v56  ;;  %v1184_v0 = vsel %vm59_vm0, %v1181_v56, %v1183_v32  ;;  %v1240_v16 = vrot.slane %v1206_v57, 7 }
  0xa7   :  { %v1207_v29 = vsel %vm2458_vm13, %v2640_v30, %v1182_v43  ;;  %v1208_v21 = vsel %vm2458_vm13, %v2684_v53, %v1184_v0 }
  0xa8   :  { %v1241_v62 = vrot.slane %v1207_v29, 7  ;;  %v1243_v52 = vrot.slane %v1208_v21, 7  ;;  %v1266_v10 = vsel %vm2500_vm14, %v2638_v24, %v1240_v16 }
  0xa9   :  { %v1300_v39 = vrot.slane %v1266_v10, 7 }
  0xaa   :  { %v1242_v63 = vsel %vm59_vm0, %v1240_v16, %v1241_v62  ;;  %v1244_v61 = vsel %vm59_vm0, %v1241_v62, %v1243_v52 }
  0xab   :  { %v1267_v12 = vsel %vm2500_vm14, %v2640_v30, %v1242_v63  ;;  %v1268_v13 = vsel %vm2500_vm14, %v2684_v53, %v1244_v61  ;;  %v1326_v17 = vsel %vm2506_vm15, %v2638_v24, %v1300_v39 }
  0xac   :  { %v1301_v38 = vrot.slane %v1267_v12, 7  ;;  %v1303_v5 = vrot.slane %v1268_v13, 7  ;;  %v1360_v22 = vrot.slane %v1326_v17, 7  ;;  %v554_v17 = vstv %s553_s26 }
  0xad   :  { %vm2932_vm3 = vcmp.eq.s32.totalorder %v554_v17, 1 }
  0xae   :  { %v1302_v15 = vsel %vm59_vm0, %v1300_v39, %v1301_v38  ;;  %v1304_v44 = vsel %vm59_vm0, %v1301_v38, %v1303_v5 }
  0xaf   :  { %v1327_v8 = vsel %vm2506_vm15, %v2640_v30, %v1302_v15  ;;  %v1328_v31 = vsel %vm2506_vm15, %v2684_v53, %v1304_v44 }
  0xb0   :  { %v1361_v4 = vrot.slane %v1327_v8, 7  ;;  %v1363_v58 = vrot.slane %v1328_v31, 7 }
  0xb2   :  { %v1364_v24 = vsel %vm59_vm0, %v1361_v4, %v1363_v58  ;;  %v1362_v2 = vsel %vm59_vm0, %v1360_v22, %v1361_v4  ;;  %vm2895_vm0 = vcmp.eq.s32.totalorder %v1383_v7, 1 }
  0xb3   :  { %v2845_v46 = vsel %vm2525_vm1, %v2684_v53, %v1364_v24  ;;  %v2850_v19 = vsel %vm2525_vm1, %v2640_v30, %v1362_v2 }
  0xb4   :  { %1407 = vrot.lane.b32.xlu1 %v2845_v46, %s1865_s12  ;;  %1405 = vrot.lane.b32.xlu0 %v2850_v19, %s1865_s12 }
  0xba   :  { %v521_v60 = vpop.permute.xlu0 %520 }
  0xbb   :  { %v544_v53 = vsel %vm2856_vm2, %v2148_v47, %v521_v60 }
  0xbc   :  { %564 = vrot.lane.b32.xlu0 %v544_v53, %s1865_s12 }
  0xbe   :  { %v525_v20 = vpop.permute.xlu1 %524 }
  0xbf   :  { %v546_v30 = vsel %vm2856_vm2, %v2178_v3, %v525_v20 }
  0xc0   :  { %568 = vrot.lane.b32.xlu0 %v546_v30, %s1865_s12 }
  0xc3   :  { %v523_v35 = vpop.permute.xlu0 %522 }
  0xc4   :  { %v545_v37 = vsel %vm2856_vm2, %v2215_v6, %v523_v35  ;;  %v1427_v35 = vstv %s1426_s27 }
  0xc5   :  { %566 = vrot.lane.b32.xlu1 %v545_v37, %s1865_s12  ;;  %vm2969_vm4 = vcmp.eq.s32.totalorder %v1427_v35, 1 }
  0xca   :  { %v527_v36 = vpop.permute.xlu1 %526 }
  0xcb   :  { %v547_v18 = vsel %vm2856_vm2, %v2266_v9, %v527_v36 }
  0xcc   :  { %570 = vrot.lane.b32.xlu1 %v547_v18, %s1865_s12 }
  0xd4   :  { %v529_v40 = vpop.permute.xlu0 %528 }
  0xd5   :  { %v531_v41 = vpop.permute.xlu1 %530  ;;  %v548_v54 = vsel %vm2856_vm2, %v2342_v59, %v529_v40 }
  0xd6   :  { %v549_v1 = vsel %vm2856_vm2, %v2353_v28, %v531_v41  ;;  %572 = vrot.lane.b32.xlu0 %v548_v54, %s1865_s12 }
  0xd7   :  { %574 = vrot.lane.b32.xlu1 %v549_v1, %s1865_s12 }
  0xe4   :  { %v535_v34 = vpop.permute.xlu1 %534  ;;  %v533_v25 = vpop.permute.xlu0 %532 }
  0xe5   :  { %v551_v33 = vsel %vm2856_vm2, %v2469_v45, %v535_v34  ;;  %v550_v11 = vsel %vm2856_vm2, %v2474_v26, %v533_v25  ;;  %vm892_vm2 = vcmask 130048  }
  0xe6   :  { %578 = vrot.lane.b32.xlu1 %v551_v33, %s1865_s12  ;;  %576 = vrot.lane.b32.xlu0 %v550_v11, %s1865_s12 }
  0xf5   :  { %v1394_v56 = vpop.permute.xlu0 %1393 }
  0xf6   :  { %v1396_v32 = vpop.permute.xlu1 %1395  ;;  %v1417_v57 = vsel %vm2895_vm0, %v2594_v50, %v1394_v56 }
  0xf7   :  { %v1418_v43 = vsel %vm2895_vm0, %v2599_v55, %v1396_v32  ;;  %1437 = vrot.lane.b32.xlu0 %v1417_v57, %s1865_s12 }
  0xf8   :  { %1439 = vrot.lane.b32.xlu1 %v1418_v43, %s1865_s12 }
 0x108   :  { %v1400_v0 = vpop.permute.xlu1 %1399  ;;  %v1398_v16 = vpop.permute.xlu0 %1397 }
 0x109   :  { %v1420_v29 = vsel %vm2895_vm0, %v2711_v42, %v1400_v0  ;;  %v1419_v21 = vsel %vm2895_vm0, %v2716_v49, %v1398_v16  ;;  %v598_v0 = vstv %s597_s0 }
 0x10a   :  { %1443 = vrot.lane.b32.xlu1 %v1420_v29, %s1865_s12  ;;  %1441 = vrot.lane.b32.xlu0 %v1419_v21, %s1865_s12  ;;  %vm3006_vm5 = vcmp.eq.s32.totalorder %v598_v0, 1 }
 0x115   :  { %v1404_v62 = vpop.permute.xlu1 %1403  ;;  %v1402_v52 = vpop.permute.xlu0 %1401 }
 0x116   :  { %v1422_v10 = vsel %vm2895_vm0, %v2785_v48, %v1404_v62  ;;  %v1421_v39 = vsel %vm2895_vm0, %v2790_v51, %v1402_v52 }
 0x117   :  { %1447 = vrot.lane.b32.xlu1 %v1422_v10, %s1865_s12  ;;  %1445 = vrot.lane.b32.xlu0 %v1421_v39, %s1865_s12 }
 0x126   :  { %v1408_v63 = vpop.permute.xlu1 %1407  ;;  %v1406_v61 = vpop.permute.xlu0 %1405 }
 0x127   :  { %v1424_v12 = vsel %vm2895_vm0, %v2845_v46, %v1408_v63  ;;  %v1423_v13 = vsel %vm2895_vm0, %v2850_v19, %v1406_v61 }
 0x128   :  { %1451 = vrot.lane.b32.xlu1 %v1424_v12, %s1865_s12  ;;  %1449 = vrot.lane.b32.xlu0 %v1423_v13, %s1865_s12 }
 0x12e   :  { %v565_v5 = vpop.permute.xlu0 %564 }
 0x12f   :  { %v588_v15 = vsel %vm2932_vm3, %v2148_v47, %v565_v5 }
 0x130   :  { %608 = vrot.lane.b32.xlu0 %v588_v15, %s1865_s12 }
 0x132   :  { %v569_v44 = vpop.permute.xlu0 %568 }
 0x133   :  { %v590_v22 = vsel %vm2932_vm3, %v2178_v3, %v569_v44 }
 0x134   :  { %612 = vrot.lane.b32.xlu0 %v590_v22, %s1865_s12 }
 0x137   :  { %v567_v8 = vpop.permute.xlu1 %566 }
 0x138   :  { %v589_v31 = vsel %vm2932_vm3, %v2215_v6, %v567_v8  ;;  %v1471_v8 = vstv %s1470_s30 }
 0x139   :  { %610 = vrot.lane.b32.xlu1 %v589_v31, %s1865_s12  ;;  %vm3043_vm6 = vcmp.eq.s32.totalorder %v1471_v8, 1 }
 0x13e   :  { %v571_v4 = vpop.permute.xlu1 %570 }
 0x13f   :  { %v591_v58 = vsel %vm2932_vm3, %v2266_v9, %v571_v4 }
 0x140   :  { %614 = vrot.lane.b32.xlu1 %v591_v58, %s1865_s12 }
 0x148   :  { %v573_v24 = vpop.permute.xlu0 %572 }
 0x149   :  { %v575_v2 = vpop.permute.xlu1 %574  ;;  %v592_v23 = vsel %vm2932_vm3, %v2342_v59, %v573_v24 }
 0x14a   :  { %v593_v27 = vsel %vm2932_vm3, %v2353_v28, %v575_v2  ;;  %616 = vrot.lane.b32.xlu0 %v592_v23, %s1865_s12 }
 0x14b   :  { %618 = vrot.lane.b32.xlu1 %v593_v27, %s1865_s12 }
 0x158   :  { %v579_v60 = vpop.permute.xlu1 %578  ;;  %v577_v53 = vpop.permute.xlu0 %576 }
 0x159   :  { %v595_v20 = vsel %vm2932_vm3, %v2469_v45, %v579_v60  ;;  %v594_v30 = vsel %vm2932_vm3, %v2474_v26, %v577_v53 }
 0x15a   :  { %622 = vrot.lane.b32.xlu1 %v595_v20, %s1865_s12  ;;  %620 = vrot.lane.b32.xlu0 %v594_v30, %s1865_s12 }
 0x169   :  { %v1438_v36 = vpop.permute.xlu0 %1437 }
 0x16a   :  { %v1440_v18 = vpop.permute.xlu1 %1439  ;;  %v1461_v40 = vsel %vm2969_vm4, %v2594_v50, %v1438_v36 }
 0x16b   :  { %v1462_v41 = vsel %vm2969_vm4, %v2599_v55, %v1440_v18  ;;  %1481 = vrot.lane.b32.xlu0 %v1461_v40, %s1865_s12 }
 0x16c   :  { %1483 = vrot.lane.b32.xlu1 %v1462_v41, %s1865_s12 }
 0x17c   :  { %v1444_v54 = vpop.permute.xlu1 %1443  ;;  %v1442_v1 = vpop.permute.xlu0 %1441 }
 0x17d   :  { %v1464_v34 = vsel %vm2969_vm4, %v2711_v42, %v1444_v54  ;;  %v1463_v25 = vsel %vm2969_vm4, %v2716_v49, %v1442_v1  ;;  %v642_v54 = vstv %s641_s3 }
 0x17e   :  { %1487 = vrot.lane.b32.xlu1 %v1464_v34, %s1865_s12  ;;  %1485 = vrot.lane.b32.xlu0 %v1463_v25, %s1865_s12  ;;  %vm3080_vm7 = vcmp.eq.s32.totalorder %v642_v54, 1 }
 0x189   :  { %v1448_v33 = vpop.permute.xlu1 %1447  ;;  %v1446_v11 = vpop.permute.xlu0 %1445 }
 0x18a   :  { %v1466_v7 = vsel %vm2969_vm4, %v2785_v48, %v1448_v33  ;;  %v1465_v14 = vsel %vm2969_vm4, %v2790_v51, %v1446_v11 }
 0x18b   :  { %1491 = vrot.lane.b32.xlu1 %v1466_v7, %s1865_s12  ;;  %1489 = vrot.lane.b32.xlu0 %v1465_v14, %s1865_s12 }
 0x19a   :  { %v1452_v56 = vpop.permute.xlu1 %1451  ;;  %v1450_v32 = vpop.permute.xlu0 %1449 }
 0x19b   :  { %v1468_v57 = vsel %vm2969_vm4, %v2845_v46, %v1452_v56  ;;  %v1467_v43 = vsel %vm2969_vm4, %v2850_v19, %v1450_v32 }
 0x19c   :  { %1495 = vrot.lane.b32.xlu1 %v1468_v57, %s1865_s12  ;;  %1493 = vrot.lane.b32.xlu0 %v1467_v43, %s1865_s12 }
 0x1a2   :  { %v609_v29 = vpop.permute.xlu0 %608 }
 0x1a3   :  { %v632_v21 = vsel %vm3006_vm5, %v2148_v47, %v609_v29 }
 0x1a4   :  { %652 = vrot.lane.b32.xlu0 %v632_v21, %s1865_s12 }
 0x1a6   :  { %v613_v62 = vpop.permute.xlu0 %612 }
 0x1a7   :  { %v634_v52 = vsel %vm3006_vm5, %v2178_v3, %v613_v62 }
 0x1a8   :  { %656 = vrot.lane.b32.xlu0 %v634_v52, %s1865_s12 }
 0x1ab   :  { %v611_v10 = vpop.permute.xlu1 %610 }
 0x1ac   :  { %v633_v39 = vsel %vm3006_vm5, %v2215_v6, %v611_v10  ;;  %v1515_v10 = vstv %s1514_s4 }
 0x1ad   :  { %654 = vrot.lane.b32.xlu1 %v633_v39, %s1865_s12  ;;  %vm3117_vm8 = vcmp.eq.s32.totalorder %v1515_v10, 1 }
 0x1b2   :  { %v615_v63 = vpop.permute.xlu1 %614 }
 0x1b3   :  { %v635_v61 = vsel %vm3006_vm5, %v2266_v9, %v615_v63 }
 0x1b4   :  { %658 = vrot.lane.b32.xlu1 %v635_v61, %s1865_s12 }
 0x1bc   :  { %v617_v12 = vpop.permute.xlu0 %616 }
 0x1bd   :  { %v619_v13 = vpop.permute.xlu1 %618  ;;  %v636_v17 = vsel %vm3006_vm5, %v2342_v59, %v617_v12 }
 0x1be   :  { %v637_v38 = vsel %vm3006_vm5, %v2353_v28, %v619_v13  ;;  %660 = vrot.lane.b32.xlu0 %v636_v17, %s1865_s12 }
 0x1bf   :  { %662 = vrot.lane.b32.xlu1 %v637_v38, %s1865_s12 }
 0x1cc   :  { %v623_v5 = vpop.permute.xlu1 %622  ;;  %v621_v15 = vpop.permute.xlu0 %620 }
 0x1cd   :  { %v639_v44 = vsel %vm3006_vm5, %v2469_v45, %v623_v5  ;;  %v638_v22 = vsel %vm3006_vm5, %v2474_v26, %v621_v15 }
 0x1ce   :  { %666 = vrot.lane.b32.xlu1 %v639_v44, %s1865_s12  ;;  %664 = vrot.lane.b32.xlu0 %v638_v22, %s1865_s12 }
 0x1dd   :  { %v1482_v4 = vpop.permute.xlu0 %1481 }
 0x1de   :  { %v1484_v58 = vpop.permute.xlu1 %1483  ;;  %v1505_v24 = vsel %vm3043_vm6, %v2594_v50, %v1482_v4 }
 0x1df   :  { %v1506_v2 = vsel %vm3043_vm6, %v2599_v55, %v1484_v58  ;;  %1525 = vrot.lane.b32.xlu0 %v1505_v24, %s1865_s12 }
 0x1e0   :  { %1527 = vrot.lane.b32.xlu1 %v1506_v2, %s1865_s12 }
 0x1f0   :  { %v1488_v23 = vpop.permute.xlu1 %1487  ;;  %v1486_v27 = vpop.permute.xlu0 %1485 }
 0x1f1   :  { %v1508_v60 = vsel %vm3043_vm6, %v2711_v42, %v1488_v23  ;;  %v1507_v53 = vsel %vm3043_vm6, %v2716_v49, %v1486_v27  ;;  %v686_v23 = vstv %s685_s1 }
 0x1f2   :  { %1531 = vrot.lane.b32.xlu1 %v1508_v60, %s1865_s12  ;;  %1529 = vrot.lane.b32.xlu0 %v1507_v53, %s1865_s12  ;;  %vm3154_vm9 = vcmp.eq.s32.totalorder %v686_v23, 1 }
 0x1fd   :  { %v1492_v20 = vpop.permute.xlu1 %1491  ;;  %v1490_v30 = vpop.permute.xlu0 %1489 }
 0x1fe   :  { %v1510_v35 = vsel %vm3043_vm6, %v2785_v48, %v1492_v20  ;;  %v1509_v37 = vsel %vm3043_vm6, %v2790_v51, %v1490_v30 }
 0x1ff   :  { %1535 = vrot.lane.b32.xlu1 %v1510_v35, %s1865_s12  ;;  %1533 = vrot.lane.b32.xlu0 %v1509_v37, %s1865_s12 }
 0x20e   :  { %v1496_v36 = vpop.permute.xlu1 %1495  ;;  %v1494_v18 = vpop.permute.xlu0 %1493 }
 0x20f   :  { %v1512_v40 = vsel %vm3043_vm6, %v2845_v46, %v1496_v36  ;;  %v1511_v41 = vsel %vm3043_vm6, %v2850_v19, %v1494_v18 }
 0x210   :  { %1539 = vrot.lane.b32.xlu1 %v1512_v40, %s1865_s12  ;;  %1537 = vrot.lane.b32.xlu0 %v1511_v41, %s1865_s12 }
 0x216   :  { %v653_v34 = vpop.permute.xlu0 %652 }
 0x217   :  { %v676_v25 = vsel %vm3080_vm7, %v2148_v47, %v653_v34 }
 0x218   :  { %696 = vrot.lane.b32.xlu0 %v676_v25, %s1865_s12 }
 0x21a   :  { %v657_v33 = vpop.permute.xlu0 %656 }
 0x21b   :  { %v678_v11 = vsel %vm3080_vm7, %v2178_v3, %v657_v33 }
 0x21c   :  { %700 = vrot.lane.b32.xlu0 %v678_v11, %s1865_s12 }
 0x21f   :  { %v655_v7 = vpop.permute.xlu1 %654 }
 0x220   :  { %v677_v14 = vsel %vm3080_vm7, %v2215_v6, %v655_v7  ;;  %v1559_v7 = vstv %s1558_s5 }
 0x221   :  { %698 = vrot.lane.b32.xlu1 %v677_v14, %s1865_s12  ;;  %vm3191_vm10 = vcmp.eq.s32.totalorder %v1559_v7, 1 }
 0x226   :  { %v659_v56 = vpop.permute.xlu1 %658 }
 0x227   :  { %v679_v32 = vsel %vm3080_vm7, %v2266_v9, %v659_v56 }
 0x228   :  { %702 = vrot.lane.b32.xlu1 %v679_v32, %s1865_s12 }
 0x230   :  { %v661_v57 = vpop.permute.xlu0 %660 }
 0x231   :  { %v663_v43 = vpop.permute.xlu1 %662  ;;  %v680_v0 = vsel %vm3080_vm7, %v2342_v59, %v661_v57 }
 0x232   :  { %v681_v16 = vsel %vm3080_vm7, %v2353_v28, %v663_v43  ;;  %704 = vrot.lane.b32.xlu0 %v680_v0, %s1865_s12 }
 0x233   :  { %706 = vrot.lane.b32.xlu1 %v681_v16, %s1865_s12 }
 0x240   :  { %v667_v29 = vpop.permute.xlu1 %666  ;;  %v665_v21 = vpop.permute.xlu0 %664 }
 0x241   :  { %v683_v62 = vsel %vm3080_vm7, %v2469_v45, %v667_v29  ;;  %v682_v52 = vsel %vm3080_vm7, %v2474_v26, %v665_v21 }
 0x242   :  { %710 = vrot.lane.b32.xlu1 %v683_v62, %s1865_s12  ;;  %708 = vrot.lane.b32.xlu0 %v682_v52, %s1865_s12 }
 0x251   :  { %v1526_v63 = vpop.permute.xlu0 %1525 }
 0x252   :  { %v1528_v61 = vpop.permute.xlu1 %1527  ;;  %v1549_v12 = vsel %vm3117_vm8, %v2594_v50, %v1526_v63 }
 0x253   :  { %v1550_v13 = vsel %vm3117_vm8, %v2599_v55, %v1528_v61  ;;  %1569 = vrot.lane.b32.xlu0 %v1549_v12, %s1865_s12 }
 0x254   :  { %1571 = vrot.lane.b32.xlu1 %v1550_v13, %s1865_s12 }
 0x264   :  { %v1532_v17 = vpop.permute.xlu1 %1531  ;;  %v1530_v38 = vpop.permute.xlu0 %1529 }
 0x265   :  { %v1552_v5 = vsel %vm3117_vm8, %v2711_v42, %v1532_v17  ;;  %v1551_v15 = vsel %vm3117_vm8, %v2716_v49, %v1530_v38  ;;  %v730_v17 = vstv %s729_s6 }
 0x266   :  { %1575 = vrot.lane.b32.xlu1 %v1552_v5, %s1865_s12  ;;  %1573 = vrot.lane.b32.xlu0 %v1551_v15, %s1865_s12  ;;  %vm3228_vm11 = vcmp.eq.s32.totalorder %v730_v17, 1 }
 0x271   :  { %v1536_v44 = vpop.permute.xlu1 %1535  ;;  %v1534_v22 = vpop.permute.xlu0 %1533 }
 0x272   :  { %v1554_v8 = vsel %vm3117_vm8, %v2785_v48, %v1536_v44  ;;  %v1553_v31 = vsel %vm3117_vm8, %v2790_v51, %v1534_v22 }
 0x273   :  { %1579 = vrot.lane.b32.xlu1 %v1554_v8, %s1865_s12  ;;  %1577 = vrot.lane.b32.xlu0 %v1553_v31, %s1865_s12 }
 0x282   :  { %v1540_v4 = vpop.permute.xlu1 %1539  ;;  %v1538_v58 = vpop.permute.xlu0 %1537 }
 0x283   :  { %v1556_v24 = vsel %vm3117_vm8, %v2845_v46, %v1540_v4  ;;  %v1555_v2 = vsel %vm3117_vm8, %v2850_v19, %v1538_v58 }
 0x284   :  { %1583 = vrot.lane.b32.xlu1 %v1556_v24, %s1865_s12  ;;  %1581 = vrot.lane.b32.xlu0 %v1555_v2, %s1865_s12 }
 0x28a   :  { %v697_v60 = vpop.permute.xlu0 %696 }
 0x28b   :  { %v720_v53 = vsel %vm3154_vm9, %v2148_v47, %v697_v60 }
 0x28c   :  { %740 = vrot.lane.b32.xlu0 %v720_v53, %s1865_s12 }
 0x28e   :  { %v701_v20 = vpop.permute.xlu0 %700 }
 0x28f   :  { %v722_v30 = vsel %vm3154_vm9, %v2178_v3, %v701_v20 }
 0x290   :  { %744 = vrot.lane.b32.xlu0 %v722_v30, %s1865_s12 }
 0x293   :  { %v699_v35 = vpop.permute.xlu1 %698 }
 0x294   :  { %v721_v37 = vsel %vm3154_vm9, %v2215_v6, %v699_v35  ;;  %v1603_v35 = vstv %s1602_s7 }
 0x295   :  { %742 = vrot.lane.b32.xlu1 %v721_v37, %s1865_s12  ;;  %vm3265_vm12 = vcmp.eq.s32.totalorder %v1603_v35, 1 }
 0x29a   :  { %v703_v36 = vpop.permute.xlu1 %702 }
 0x29b   :  { %v723_v18 = vsel %vm3154_vm9, %v2266_v9, %v703_v36 }
 0x29c   :  { %746 = vrot.lane.b32.xlu1 %v723_v18, %s1865_s12 }
 0x2a4   :  { %v705_v40 = vpop.permute.xlu0 %704 }
 0x2a5   :  { %v707_v41 = vpop.permute.xlu1 %706  ;;  %v724_v54 = vsel %vm3154_vm9, %v2342_v59, %v705_v40 }
 0x2a6   :  { %v725_v1 = vsel %vm3154_vm9, %v2353_v28, %v707_v41  ;;  %748 = vrot.lane.b32.xlu0 %v724_v54, %s1865_s12 }
 0x2a7   :  { %750 = vrot.lane.b32.xlu1 %v725_v1, %s1865_s12 }
 0x2b4   :  { %v711_v34 = vpop.permute.xlu1 %710  ;;  %v709_v25 = vpop.permute.xlu0 %708 }
 0x2b5   :  { %v727_v33 = vsel %vm3154_vm9, %v2469_v45, %v711_v34  ;;  %v726_v11 = vsel %vm3154_vm9, %v2474_v26, %v709_v25 }
 0x2b6   :  { %754 = vrot.lane.b32.xlu1 %v727_v33, %s1865_s12  ;;  %752 = vrot.lane.b32.xlu0 %v726_v11, %s1865_s12 }
 0x2c5   :  { %v1570_v56 = vpop.permute.xlu0 %1569 }
 0x2c6   :  { %v1572_v32 = vpop.permute.xlu1 %1571  ;;  %v1593_v57 = vsel %vm3191_vm10, %v2594_v50, %v1570_v56 }
 0x2c7   :  { %v1594_v43 = vsel %vm3191_vm10, %v2599_v55, %v1572_v32  ;;  %1613 = vrot.lane.b32.xlu0 %v1593_v57, %s1865_s12 }
 0x2c8   :  { %1615 = vrot.lane.b32.xlu1 %v1594_v43, %s1865_s12 }
 0x2d8   :  { %v1576_v0 = vpop.permute.xlu1 %1575  ;;  %v1574_v16 = vpop.permute.xlu0 %1573 }
 0x2d9   :  { %v1596_v29 = vsel %vm3191_vm10, %v2711_v42, %v1576_v0  ;;  %v1595_v21 = vsel %vm3191_vm10, %v2716_v49, %v1574_v16  ;;  %v774_v0 = vstv %s773_s8 }
 0x2da   :  { %1619 = vrot.lane.b32.xlu1 %v1596_v29, %s1865_s12  ;;  %1617 = vrot.lane.b32.xlu0 %v1595_v21, %s1865_s12  ;;  %vm3302_vm13 = vcmp.eq.s32.totalorder %v774_v0, 1 }
 0x2e5   :  { %v1580_v62 = vpop.permute.xlu1 %1579  ;;  %v1578_v52 = vpop.permute.xlu0 %1577 }
 0x2e6   :  { %v1598_v10 = vsel %vm3191_vm10, %v2785_v48, %v1580_v62  ;;  %v1597_v39 = vsel %vm3191_vm10, %v2790_v51, %v1578_v52 }
 0x2e7   :  { %1623 = vrot.lane.b32.xlu1 %v1598_v10, %s1865_s12  ;;  %1621 = vrot.lane.b32.xlu0 %v1597_v39, %s1865_s12 }
 0x2f6   :  { %v1584_v63 = vpop.permute.xlu1 %1583  ;;  %v1582_v61 = vpop.permute.xlu0 %1581 }
 0x2f7   :  { %v1600_v12 = vsel %vm3191_vm10, %v2845_v46, %v1584_v63  ;;  %v1599_v13 = vsel %vm3191_vm10, %v2850_v19, %v1582_v61 }
 0x2f8   :  { %1627 = vrot.lane.b32.xlu1 %v1600_v12, %s1865_s12  ;;  %1625 = vrot.lane.b32.xlu0 %v1599_v13, %s1865_s12 }
 0x2fe   :  { %v741_v5 = vpop.permute.xlu0 %740 }
 0x2ff   :  { %v764_v15 = vsel %vm3228_vm11, %v2148_v47, %v741_v5 }
 0x300   :  { %784 = vrot.lane.b32.xlu0 %v764_v15, %s1865_s12 }
 0x302   :  { %v745_v44 = vpop.permute.xlu0 %744 }
 0x303   :  { %v766_v22 = vsel %vm3228_vm11, %v2178_v3, %v745_v44 }
 0x304   :  { %788 = vrot.lane.b32.xlu0 %v766_v22, %s1865_s12 }
 0x307   :  { %v743_v8 = vpop.permute.xlu1 %742 }
 0x308   :  { %v765_v31 = vsel %vm3228_vm11, %v2215_v6, %v743_v8  ;;  %v1647_v8 = vstv %s1646_s9 }
 0x309   :  { %786 = vrot.lane.b32.xlu1 %v765_v31, %s1865_s12  ;;  %vm3339_vm14 = vcmp.eq.s32.totalorder %v1647_v8, 1 }
 0x30e   :  { %v747_v4 = vpop.permute.xlu1 %746 }
 0x30f   :  { %v767_v58 = vsel %vm3228_vm11, %v2266_v9, %v747_v4 }
 0x310   :  { %790 = vrot.lane.b32.xlu1 %v767_v58, %s1865_s12 }
 0x318   :  { %v749_v24 = vpop.permute.xlu0 %748 }
 0x319   :  { %v751_v2 = vpop.permute.xlu1 %750  ;;  %v768_v23 = vsel %vm3228_vm11, %v2342_v59, %v749_v24 }
 0x31a   :  { %v769_v27 = vsel %vm3228_vm11, %v2353_v28, %v751_v2  ;;  %792 = vrot.lane.b32.xlu0 %v768_v23, %s1865_s12 }
 0x31b   :  { %794 = vrot.lane.b32.xlu1 %v769_v27, %s1865_s12 }
 0x328   :  { %v755_v60 = vpop.permute.xlu1 %754  ;;  %v753_v53 = vpop.permute.xlu0 %752 }
 0x329   :  { %v771_v20 = vsel %vm3228_vm11, %v2469_v45, %v755_v60  ;;  %v770_v30 = vsel %vm3228_vm11, %v2474_v26, %v753_v53 }
 0x32a   :  { %798 = vrot.lane.b32.xlu1 %v771_v20, %s1865_s12  ;;  %796 = vrot.lane.b32.xlu0 %v770_v30, %s1865_s12 }
 0x339   :  { %v1614_v36 = vpop.permute.xlu0 %1613 }
 0x33a   :  { %v1616_v18 = vpop.permute.xlu1 %1615  ;;  %v1637_v40 = vsel %vm3265_vm12, %v2594_v50, %v1614_v36 }
 0x33b   :  { %v1638_v41 = vsel %vm3265_vm12, %v2599_v55, %v1616_v18  ;;  %1657 = vrot.lane.b32.xlu0 %v1637_v40, %s1865_s12 }
 0x33c   :  { %1659 = vrot.lane.b32.xlu1 %v1638_v41, %s1865_s12 }
 0x34c   :  { %v1620_v54 = vpop.permute.xlu1 %1619  ;;  %v1618_v1 = vpop.permute.xlu0 %1617 }
 0x34d   :  { %v1640_v34 = vsel %vm3265_vm12, %v2711_v42, %v1620_v54  ;;  %v1639_v25 = vsel %vm3265_vm12, %v2716_v49, %v1618_v1  ;;  %v818_v54 = vstv %s817_s10 }
 0x34e   :  { %1663 = vrot.lane.b32.xlu1 %v1640_v34, %s1865_s12  ;;  %1661 = vrot.lane.b32.xlu0 %v1639_v25, %s1865_s12  ;;  %vm3376_vm15 = vcmp.eq.s32.totalorder %v818_v54, 1 }
 0x359   :  { %v1624_v33 = vpop.permute.xlu1 %1623  ;;  %v1622_v11 = vpop.permute.xlu0 %1621 }
 0x35a   :  { %v1642_v7 = vsel %vm3265_vm12, %v2785_v48, %v1624_v33  ;;  %v1641_v14 = vsel %vm3265_vm12, %v2790_v51, %v1622_v11 }
 0x35b   :  { %1667 = vrot.lane.b32.xlu1 %v1642_v7, %s1865_s12  ;;  %1665 = vrot.lane.b32.xlu0 %v1641_v14, %s1865_s12 }
 0x36a   :  { %v1628_v56 = vpop.permute.xlu1 %1627  ;;  %v1626_v32 = vpop.permute.xlu0 %1625 }
 0x36b   :  { %v1644_v57 = vsel %vm3265_vm12, %v2845_v46, %v1628_v56  ;;  %v1643_v43 = vsel %vm3265_vm12, %v2850_v19, %v1626_v32 }
 0x36c   :  { %1671 = vrot.lane.b32.xlu1 %v1644_v57, %s1865_s12  ;;  %1669 = vrot.lane.b32.xlu0 %v1643_v43, %s1865_s12 }
 0x372   :  { %v785_v29 = vpop.permute.xlu0 %784 }
 0x373   :  { %v808_v21 = vsel %vm3302_vm13, %v2148_v47, %v785_v29 }
 0x374   :  { %828 = vrot.lane.b32.xlu0 %v808_v21, %s1865_s12 }
 0x376   :  { %v789_v62 = vpop.permute.xlu0 %788 }
 0x377   :  { %v810_v52 = vsel %vm3302_vm13, %v2178_v3, %v789_v62 }
 0x378   :  { %832 = vrot.lane.b32.xlu0 %v810_v52, %s1865_s12 }
 0x37b   :  { %v787_v10 = vpop.permute.xlu1 %786 }
 0x37c   :  { %v809_v39 = vsel %vm3302_vm13, %v2215_v6, %v787_v10 }
 0x37d   :  { %830 = vrot.lane.b32.xlu1 %v809_v39, %s1865_s12 }
 0x382   :  { %v791_v63 = vpop.permute.xlu1 %790 }
 0x383   :  { %v811_v61 = vsel %vm3302_vm13, %v2266_v9, %v791_v63 }
 0x384   :  { %834 = vrot.lane.b32.xlu1 %v811_v61, %s1865_s12 }
 0x38c   :  { %v793_v12 = vpop.permute.xlu0 %792 }
 0x38d   :  { %v795_v13 = vpop.permute.xlu1 %794  ;;  %v812_v17 = vsel %vm3302_vm13, %v2342_v59, %v793_v12 }
 0x38e   :  { %v813_v38 = vsel %vm3302_vm13, %v2353_v28, %v795_v13  ;;  %836 = vrot.lane.b32.xlu0 %v812_v17, %s1865_s12 }
 0x38f   :  { %838 = vrot.lane.b32.xlu1 %v813_v38, %s1865_s12 }
 0x39c   :  { %v799_v5 = vpop.permute.xlu1 %798  ;;  %v797_v15 = vpop.permute.xlu0 %796 }
 0x39d   :  { %v815_v44 = vsel %vm3302_vm13, %v2469_v45, %v799_v5  ;;  %v814_v22 = vsel %vm3302_vm13, %v2474_v26, %v797_v15 }
 0x39e   :  { %842 = vrot.lane.b32.xlu1 %v815_v44, %s1865_s12  ;;  %840 = vrot.lane.b32.xlu0 %v814_v22, %s1865_s12 }
 0x3ad   :  { %v1658_v4 = vpop.permute.xlu0 %1657 }
 0x3ae   :  { %v1660_v58 = vpop.permute.xlu1 %1659  ;;  %v1681_v24 = vsel %vm3339_vm14, %v2594_v50, %v1658_v4 }
 0x3af   :  { %v1682_v2 = vsel %vm3339_vm14, %v2599_v55, %v1660_v58  ;;  %1701 = vrot.lane.b32.xlu0 %v1681_v24, %s1865_s12 }
 0x3b0   :  { %1703 = vrot.lane.b32.xlu1 %v1682_v2, %s1865_s12 }
 0x3c0   :  { %v1664_v23 = vpop.permute.xlu1 %1663  ;;  %v1662_v27 = vpop.permute.xlu0 %1661 }
 0x3c1   :  { %v1684_v60 = vsel %vm3339_vm14, %v2711_v42, %v1664_v23  ;;  %v1683_v53 = vsel %vm3339_vm14, %v2716_v49, %v1662_v27 }
 0x3c2   :  { %1707 = vrot.lane.b32.xlu1 %v1684_v60, %s1865_s12  ;;  %1705 = vrot.lane.b32.xlu0 %v1683_v53, %s1865_s12 }
 0x3cd   :  { %v1668_v20 = vpop.permute.xlu1 %1667  ;;  %v1666_v30 = vpop.permute.xlu0 %1665 }
 0x3ce   :  { %v1686_v35 = vsel %vm3339_vm14, %v2785_v48, %v1668_v20  ;;  %v1685_v37 = vsel %vm3339_vm14, %v2790_v51, %v1666_v30 }
 0x3cf   :  { %1711 = vrot.lane.b32.xlu1 %v1686_v35, %s1865_s12  ;;  %1709 = vrot.lane.b32.xlu0 %v1685_v37, %s1865_s12 }
 0x3de   :  { %v1672_v36 = vpop.permute.xlu1 %1671  ;;  %v1670_v18 = vpop.permute.xlu0 %1669 }
 0x3df   :  { %v1688_v40 = vsel %vm3339_vm14, %v2845_v46, %v1672_v36  ;;  %v1687_v41 = vsel %vm3339_vm14, %v2850_v19, %v1670_v18 }
 0x3e0   :  { %1715 = vrot.lane.b32.xlu1 %v1688_v40, %s1865_s12  ;;  %1713 = vrot.lane.b32.xlu0 %v1687_v41, %s1865_s12  ;;  %s1690_s12 = scalar_select %p1689_p0, 1, 0 }
 0x3e6   :  { %v829_v34 = vpop.permute.xlu0 %828 }
 0x3e7   :  { %v852_v25 = vsel %vm3376_vm15, %v2148_v47, %v829_v34 }
 0x3e8   :  { %868 = vrot.lane.b32.xlu0 %v852_v25, %s1866_s11 }
 0x3ea   :  { %v833_v33 = vpop.permute.xlu0 %832 }
 0x3eb   :  { %v854_v11 = vsel %vm3376_vm15, %v2178_v3, %v833_v33 }
 0x3ec   :  { %872 = vrot.lane.b32.xlu0 %v854_v11, %s1866_s11 }
 0x3ef   :  { %v831_v7 = vpop.permute.xlu1 %830 }
 0x3f0   :  { %v853_v14 = vsel %vm3376_vm15, %v2215_v6, %v831_v7 }
 0x3f1   :  { %870 = vrot.lane.b32.xlu1 %v853_v14, %s1866_s11 }
 0x3f6   :  { %v835_v56 = vpop.permute.xlu1 %834 }
 0x3f7   :  { %v855_v47 = vsel %vm3376_vm15, %v2266_v9, %v835_v56 }
 0x3f8   :  { %874 = vrot.lane.b32.xlu1 %v855_v47, %s1866_s11 }
 0x400   :  { %v837_v32 = vpop.permute.xlu0 %836 }
 0x401   :  { %v839_v57 = vpop.permute.xlu1 %838  ;;  %v856_v3 = vsel %vm3376_vm15, %v2342_v59, %v837_v32  ;;  %v1691_v59 = vstv %s1690_s12 }
 0x402   :  { %v857_v6 = vsel %vm3376_vm15, %v2353_v28, %v839_v57  ;;  %876 = vrot.lane.b32.xlu0 %v856_v3, %s1866_s11  ;;  %vm3413_vm1 = vcmp.eq.s32.totalorder %v1691_v59, 1 }
 0x403   :  { %878 = vrot.lane.b32.xlu1 %v857_v6, %s1866_s11 }
 0x410   :  { %v843_v43 = vpop.permute.xlu1 %842  ;;  %v841_v0 = vpop.permute.xlu0 %840 }
 0x411   :  { %v859_v9 = vsel %vm3376_vm15, %v2469_v45, %v843_v43  ;;  %v858_v16 = vsel %vm3376_vm15, %v2474_v26, %v841_v0 }
 0x412   :  { %882 = vrot.lane.b32.xlu1 %v859_v9, %s1866_s11  ;;  %880 = vrot.lane.b32.xlu0 %v858_v16, %s1866_s11 }
 0x421   :  { %v1702_v29 = vpop.permute.xlu0 %1701 }
 0x422   :  { %v1704_v21 = vpop.permute.xlu1 %1703  ;;  %v1725_v45 = vsel %vm3413_vm1, %v2594_v50, %v1702_v29 }
 0x423   :  { %v1726_v26 = vsel %vm3413_vm1, %v2599_v55, %v1704_v21  ;;  %1741 = vrot.lane.b32.xlu0 %v1725_v45, %s1866_s11 }
 0x424   :  { %1743 = vrot.lane.b32.xlu1 %v1726_v26, %s1866_s11 }
 0x434   :  { %v1708_v62 = vpop.permute.xlu1 %1707  ;;  %v1706_v52 = vpop.permute.xlu0 %1705 }
 0x435   :  { %v1728_v10 = vsel %vm3413_vm1, %v2711_v42, %v1708_v62  ;;  %v1727_v39 = vsel %vm3413_vm1, %v2716_v49, %v1706_v52 }
 0x436   :  { %1747 = vrot.lane.b32.xlu1 %v1728_v10, %s1866_s11  ;;  %1745 = vrot.lane.b32.xlu0 %v1727_v39, %s1866_s11 }
 0x441   :  { %v1712_v50 = vpop.permute.xlu1 %1711  ;;  %v1710_v55 = vpop.permute.xlu0 %1709 }
 0x442   :  { %v1730_v63 = vsel %vm3413_vm1, %v2785_v48, %v1712_v50  ;;  %v1729_v61 = vsel %vm3413_vm1, %v2790_v51, %v1710_v55 }
 0x443   :  { %1751 = vrot.lane.b32.xlu1 %v1730_v63, %s1866_s11  ;;  %1749 = vrot.lane.b32.xlu0 %v1729_v61, %s1866_s11 }
 0x452   :  { %v1716_v42 = vpop.permute.xlu1 %1715  ;;  %v1714_v49 = vpop.permute.xlu0 %1713 }
 0x453   :  { %v1732_v12 = vsel %vm3413_vm1, %v2845_v46, %v1716_v42  ;;  %v1731_v13 = vsel %vm3413_vm1, %v2850_v19, %v1714_v49 }
 0x454   :  { %1755 = vrot.lane.b32.xlu1 %v1732_v12, %s1866_s11  ;;  %1753 = vrot.lane.b32.xlu0 %v1731_v13, %s1866_s11 }
 0x45a   :  { %v869_v48 = vpop.permute.xlu0 %868 }
 0x45b   :  { %893 = vst.msk [vmem:[#allocation7] sm:$0xff] %vm892_vm2, %v869_v48 }
 0x45e   :  { %v873_v51 = vpop.permute.xlu0 %872 }
 0x45f   :  { %895 = vst.msk [vmem:[#allocation7 + $0x10] sm:$0xff] %vm892_vm2, %v873_v51 }
 0x463   :  { %v871_v17 = vpop.permute.xlu1 %870 }
 0x464   :  { %894 = vst.msk [vmem:[#allocation7 + $0x8] sm:$0xff] %vm892_vm2, %v871_v17 }
 0x46a   :  { %v875_v38 = vpop.permute.xlu1 %874 }
 0x46b   :  { %896 = vst.msk [vmem:[#allocation7 + $0x18] sm:$0xff] %vm892_vm2, %v875_v38 }
 0x474   :  { %v877_v46 = vpop.permute.xlu0 %876 }
 0x475   :  { %v879_v5 = vpop.permute.xlu1 %878  ;;  %897 = vst.msk [vmem:[#allocation7 + $0x20] sm:$0xff] %vm892_vm2, %v877_v46 }
 0x476   :  { %898 = vst.msk [vmem:[#allocation7 + $0x28] sm:$0xff] %vm892_vm2, %v879_v5 }
 0x484   :  { %v883_v19 = vpop.permute.xlu1 %882  ;;  %v881_v15 = vpop.permute.xlu0 %880 }
 0x485   :  { %900 = vst.msk [vmem:[#allocation7 + $0x38] sm:$0xff] %vm892_vm2, %v883_v19  ;;  %899 = vst.msk [vmem:[#allocation7 + $0x30] sm:$0xff] %vm892_vm2, %v881_v15 }
 0x495   :  { %v1742_v44 = vpop.permute.xlu0 %1741 }
 0x496   :  { %v1744_v22 = vpop.permute.xlu1 %1743  ;;  %1766 = vst.msk [vmem:[#allocation7 + $0x40] sm:$0xff] %vm892_vm2, %v1742_v44 }
 0x497   :  { %1767 = vst.msk [vmem:[#allocation7 + $0x48] sm:$0xff] %vm892_vm2, %v1744_v22 }
 0x4a8   :  { %v1748_v8 = vpop.permute.xlu1 %1747  ;;  %v1746_v31 = vpop.permute.xlu0 %1745 }
 0x4a9   :  { %1769 = vst.msk [vmem:[#allocation7 + $0x58] sm:$0xff] %vm892_vm2, %v1748_v8  ;;  %1768 = vst.msk [vmem:[#allocation7 + $0x50] sm:$0xff] %vm892_vm2, %v1746_v31 }
 0x4b5   :  { %v1752_v4 = vpop.permute.xlu1 %1751  ;;  %v1750_v58 = vpop.permute.xlu0 %1749 }
 0x4b6   :  { %1771 = vst.msk [vmem:[#allocation7 + $0x68] sm:$0xff] %vm892_vm2, %v1752_v4  ;;  %1770 = vst.msk [vmem:[#allocation7 + $0x60] sm:$0xff] %vm892_vm2, %v1750_v58 }
 0x4c6   :  { %v1756_v24 = vpop.permute.xlu1 %1755  ;;  %v1754_v2 = vpop.permute.xlu0 %1753 }
 0x4c7   :  { %1773 = vst.msk [vmem:[#allocation7 + $0x78] sm:$0xff] %vm892_vm2, %v1756_v24  ;;  %1772 = vst.msk [vmem:[#allocation7 + $0x70] sm:$0xff] %vm892_vm2, %v1754_v2 }
 0x4c8   :  { %1844 = shalt.err (!%p1841_p5)
}
 0x4c9   :  { %s1845_s18 = scalar_lea.hbm %s3482_s2, 2048 }
 0x4ca   :  { %p1846_p6 = scmp.ne.s32.totalorder %s3482_s2, %s1845_s18  ;;  %p1849_p7 = scmp.lt.u32.totalorder %s1845_s18, %s3482_s2 }
 0x4cc   :  { %p1851_p8 = pnand %p1849_p7, %p1846_p6 }
 0x4ce   :  { %1854 = shalt.err (!%p1851_p8)
}
 0x4cf   :  { %1785 = dma.vmem_to_hbm [thread:$0]  %s1780_s14, 2048, %s3482_s2, [#allocation6], %s1863_s28, %s1863_s28, %s1864_s29  }
 0x4d0   :  { %1859 = dma.done.wait [#allocation6], 2048  }
 0x4d1   :  { %1860 = vsyncadd [#allocation6], 4294965248 }
 0x4d2   :  { %1789 = vsyncpa [#allocation5], 1 }
 0x4d3   :  { %1790 = vsyncpa [#allocation6], 1 }

</bundles_post_ra>
